<compile_context>
chip_gen: v6e
topology: v6e:2x2x1
jax: 0.10.0
libtpu: 0.0.40
codegen_flags: <defaults>
</compile_context>

<pallas_src>
import functools

import jax
import jax.numpy as jnp
from jax.experimental import pallas as pl
from jax.experimental.pallas import tpu as pltpu


# ---------------------------------------------------------------------------
# Tiling constants / helpers
# ---------------------------------------------------------------------------

_WEIGHT_TILE_BYTES = 14 * 1024 * 1024   # per-buffer budget for the streamed bf16 weight tile
_TN_CAP = 1024                          # output-column tile cap (keeps N/tn >= 2 for megacore)
_TM_CAP = 256                           # max batch rows per tile (one tile for realistic batches)
_VMEM_LIMIT_BYTES = 48 * 1024 * 1024    # safe on v5e/v6e (128 MiB phys) and v7x (64 MiB phys)


def _round_up(x, m):
    return (x + m - 1) // m * m


def _largest_divisor_tile(dim, unit, cap):
    """Largest multiple of `unit` that divides `dim` and is <= cap (else dim)."""
    best = 0
    t = unit
    limit = min(dim, cap)
    while t <= limit:
        if dim % t == 0:
            best = t
        t += unit
    return best if best else dim


# ---------------------------------------------------------------------------
# Fused Linear + ReLU kernel
# ---------------------------------------------------------------------------

def _linear_relu_kernel(x_ref, w_ref, b_ref, o_ref, acc_ref):
    """One (tm, tn) output tile of relu(x @ w + b), reduced over the K grid axis.

    x_ref: (tm, tk) bf16, w_ref: (tk, tn) bf16, b_ref: (1, tn) f32,
    acc_ref: (tm, tn) f32 VMEM scratch accumulator, o_ref: (tm, tn) out dtype.
    """
    k = pl.program_id(2)

    @pl.when(k == 0)
    def _():
        acc_ref[...] = jnp.zeros_like(acc_ref)

    # bf16 x bf16 on the MXU, f32 accumulation in VMEM scratch.
    acc_ref[...] += jnp.dot(x_ref[...], w_ref[...],
                            preferred_element_type=jnp.float32)

    @pl.when(k == pl.num_programs(2) - 1)
    def _():
        o_ref[...] = jnp.maximum(acc_ref[...] + b_ref[...], 0.0).astype(o_ref.dtype)


def linear_relu(x, w, b, *, out_dtype=jnp.float32,
                weight_tile_bytes=_WEIGHT_TILE_BYTES):
    """y = relu(x @ w + b) as one tiled Pallas kernel.

    x: [M, K], w: [K, N], b: [N] or [1, N].  Operands stream to the MXU in
    bf16 with f32 accumulation; output dtype is `out_dtype`.
    """
    M, K = x.shape
    K2, N = w.shape
    assert K == K2
    b = jnp.asarray(b).reshape(1, N).astype(jnp.float32)

    # One-time casts in the wrapper: no per-grid-step VPU packing inside the
    # kernel, halved HBM bytes for x and w.  (h from layer 1 is already bf16.)
    x = x.astype(jnp.bfloat16)
    w = w.astype(jnp.bfloat16)

    # Row padding: multiple of 16 (bf16 packs 16 sublanes per vreg).
    if M <= _TM_CAP:
        m_pad = _round_up(max(M, 1), 16)
        tm = m_pad
    else:
        m_pad = _round_up(M, _TM_CAP)
        tm = _TM_CAP
    if m_pad != M:
        x = jnp.pad(x, ((0, m_pad - M), (0, 0)))

    # N tile: lane-dense multiple of 128; cap keeps >= 2 j-programs at N=4096
    # so the megacore split has something to chew on when i is a single program.
    tn = _largest_divisor_tile(N, 128, _TN_CAP)
    # K tile: as large as the per-buffer bf16 weight-tile budget allows.
    tk_cap = max(128, weight_tile_bytes // (2 * tn))
    tk = _largest_divisor_tile(K, 128, tk_cap)

    grid = (m_pad // tm, N // tn, K // tk)
    n_i, n_j, _ = grid

    out_bytes = jnp.dtype(out_dtype).itemsize
    cost = pl.CostEstimate(
        flops=2 * m_pad * N * K,
        transcendentals=0,
        bytes_accessed=(n_i * K * N * 2        # weights, re-streamed per row tile
                        + n_j * m_pad * K * 2  # activations, re-streamed per N tile
                        + m_pad * N * out_bytes
                        + N * 4),
    )

    out = pl.pallas_call(
        _linear_relu_kernel,
        out_shape=jax.ShapeDtypeStruct((m_pad, N), out_dtype),
        grid_spec=pltpu.PrefetchScalarGridSpec(
            num_scalar_prefetch=0,
            grid=grid,
            in_specs=[
                # activations: canonical (i, k) reduction tiling (bf16)
                pl.BlockSpec((tm, tk), lambda i, j, k: (i, k)),
                # weights: the big streamed operand, MiB-scale bf16 tiles
                pl.BlockSpec((tk, tn), lambda i, j, k: (k, j)),
                # bias: one lane-row per N tile (f32)
                pl.BlockSpec((1, tn), lambda i, j, k: (0, j)),
            ],
            out_specs=pl.BlockSpec((tm, tn), lambda i, j, k: (i, j)),
            scratch_shapes=[pltpu.VMEM((tm, tn), jnp.float32)],
        ),
        compiler_params=pltpu.CompilerParams(
            # j ("parallel") carries the megacore split on v7x; i is typically a
            # single program for inference-sized batches.  (CORE_PARALLEL on j
            # is an option if the default split does not engage in the trace.)
            dimension_semantics=("parallel", "parallel", "arbitrary"),
            vmem_limit_bytes=_VMEM_LIMIT_BYTES,
        ),
        cost_estimate=cost,
    )(x, w, b)

    return out[:M] if m_pad != M else out


# ---------------------------------------------------------------------------
# VGGClassifier forward
# ---------------------------------------------------------------------------

def vgg_classifier_forward(x, params):
    """Pallas implementation of VGGClassifier.forward (eval mode)."""
    w1, b1, w2, b2 = params
    # ColumnParallelLinear(25088, 4096) + ReLU (+ Dropout = identity):
    # emit bf16 so layer 2's MXU feed needs no extra cast / f32 round trip.
    h = linear_relu(x, w1, b1, out_dtype=jnp.bfloat16)
    # RowParallelLinear(4096, 4096) + ReLU (+ Dropout = identity):
    y = linear_relu(h, w2, b2, out_dtype=jnp.float32)
    return y


# ---------------------------------------------------------------------------
# Demo / self-check
# ---------------------------------------------------------------------------

if __name__ == "__main__":
    # Real module: in_features = 512*7*7 = 25088, hidden = 4096.
    # Scaled-down demo shapes with the same structure:
    BATCH = 4
    IN_FEATURES = 1024
    HIDDEN = 512

    key = jax.random.PRNGKey(0)
    kx, k1, k2, k3, k4 = jax.random.split(key, 5)
    x = jax.random.normal(kx, (BATCH, IN_FEATURES), jnp.float32)
    w1 = jax.random.normal(k1, (IN_FEATURES, HIDDEN), jnp.float32) / jnp.sqrt(IN_FEATURES)
    b1 = jax.random.normal(k2, (HIDDEN,), jnp.float32) * 0.01
    w2 = jax.random.normal(k3, (HIDDEN, HIDDEN), jnp.float32) / jnp.sqrt(HIDDEN)
    b2 = jax.random.normal(k4, (HIDDEN,), jnp.float32) * 0.01
    params = (w1, b1, w2, b2)

    fwd = jax.jit(vgg_classifier_forward)
    out = jax.block_until_ready(fwd(x, params))

    # Pure-JAX reference: same math with operands rounded to bf16 (what the MXU
    # sees) and the layer-1 activation carried in bf16; dropout = identity.
    def _rt(a):
        return a.astype(jnp.bfloat16).astype(jnp.float32)

    h_ref = jnp.maximum(_rt(x) @ _rt(w1) + b1, 0.0)
    h_ref_bf16 = h_ref.astype(jnp.bfloat16)
    y_ref = jnp.maximum(_rt(h_ref_bf16) @ _rt(w2) + b2, 0.0)

    assert out.shape == (BATCH, HIDDEN)
    assert jnp.allclose(out, y_ref, atol=2e-2, rtol=2e-2), float(
        jnp.max(jnp.abs(out - y_ref)))

    # Also exercise the multi-step K reduction path (the previously broken case)
    # by forcing a small weight-tile budget -> K // tk = 4 on the demo shapes.
    h_small = jax.block_until_ready(
        jax.jit(functools.partial(linear_relu, out_dtype=jnp.bfloat16,
                                  weight_tile_bytes=256 * 1024))(x, w1, b1))
    assert jnp.allclose(h_small.astype(jnp.float32),
                        h_ref_bf16.astype(jnp.float32),
                        atol=2e-2, rtol=2e-2), float(
        jnp.max(jnp.abs(h_small.astype(jnp.float32) - h_ref_bf16.astype(jnp.float32))))

    print("KERNEL_OK")
</pallas_src>

<mosaic_0001>
module attributes {stable_mosaic.version = 11 : i64} {
  func.func @_linear_relu_kernel(%arg0: i32, %arg1: i32, %arg2: i32, %arg3: memref<16x1024xbf16, #tpu.memory_space<vmem>>, %arg4: memref<1024x512xbf16, #tpu.memory_space<vmem>>, %arg5: memref<1x512xf32, #tpu.memory_space<vmem>>, %arg6: memref<16x512xbf16, #tpu.memory_space<vmem>>, %arg7: memref<16x512xf32, #tpu.memory_space<vmem>>) attributes {dimension_semantics = [#tpu.dimension_semantics<parallel>, #tpu.dimension_semantics<parallel>, #tpu.dimension_semantics<arbitrary>], iteration_bounds = array<i64: 1, 1, 1>, scalar_prefetch = 0 : i64, scratch_operands = 1 : i64, tpu.core_type = #tpu.core_type<tc>, window_params = [{transform_indices = @transform_0, window_bounds = array<i64: 16, 1024>}, {transform_indices = @transform_1, window_bounds = array<i64: 1024, 512>}, {transform_indices = @transform_2, window_bounds = array<i64: 1, 512>}, {transform_indices = @transform_3, window_bounds = array<i64: 16, 512>}]} {
    %c0_i32 = arith.constant 0 : i32
    %0 = arith.cmpi eq, %arg2, %c0_i32 : i32
    %1 = arith.extui %0 : i1 to i32
    %c0_i32_0 = arith.constant 0 : i32
    %2 = arith.cmpi ne, %1, %c0_i32_0 : i32
    scf.if %2 {
      %cst_10 = arith.constant 0.000000e+00 : f32
      %12 = vector.broadcast %cst_10 : f32 to vector<16x512xf32>
      %c0_11 = arith.constant 0 : index
      %c0_12 = arith.constant 0 : index
      %13 = vector.load %arg7[%c0_11, %c0_12] : memref<16x512xf32, #tpu.memory_space<vmem>>, vector<16x512xf32>
      tpu.vector_store %arg7[%c0_11, %c0_12], %12 {strides = array<i32>} : memref<16x512xf32, #tpu.memory_space<vmem>>, vector<16x512xf32>,
    } else {
    }
    %c0 = arith.constant 0 : index
    %c0_1 = arith.constant 0 : index
    %3 = vector.load %arg7[%c0, %c0_1] : memref<16x512xf32, #tpu.memory_space<vmem>>, vector<16x512xf32>
    %c0_2 = arith.constant 0 : index
    %c0_3 = arith.constant 0 : index
    %4 = vector.load %arg3[%c0_2, %c0_3] : memref<16x1024xbf16, #tpu.memory_space<vmem>>, vector<16x1024xbf16>
    %c0_4 = arith.constant 0 : index
    %c0_5 = arith.constant 0 : index
    %5 = vector.load %arg4[%c0_4, %c0_5] : memref<1024x512xbf16, #tpu.memory_space<vmem>>, vector<1024x512xbf16>
    %cst = arith.constant dense<0.000000e+00> : vector<16x512xf32>
    %6 = tpu.matmul %4, %5, %cst {dimension_numbers = #tpu.dot_dimension_numbers<[1], [0], [0], [1], [0, 0, 1, 1], [], []>} : vector<16x1024xbf16>, vector<1024x512xbf16>, vector<16x512xf32> -> vector<16x512xf32>
    %7 = arith.addf %3, %6 : vector<16x512xf32>
    %c0_6 = arith.constant 0 : index
    %c0_7 = arith.constant 0 : index
    %8 = vector.load %arg7[%c0_6, %c0_7] : memref<16x512xf32, #tpu.memory_space<vmem>>, vector<16x512xf32>
    tpu.vector_store %arg7[%c0_6, %c0_7], %7 {strides = array<i32>} : memref<16x512xf32, #tpu.memory_space<vmem>>, vector<16x512xf32>,
    %c0_i32_8 = arith.constant 0 : i32
    %9 = arith.cmpi eq, %arg2, %c0_i32_8 : i32
    %10 = arith.extui %9 : i1 to i32
    %c0_i32_9 = arith.constant 0 : i32
    %11 = arith.cmpi ne, %10, %c0_i32_9 : i32
    scf.if %11 {
      %c0_10 = arith.constant 0 : index
      %c0_11 = arith.constant 0 : index
      %12 = vector.load %arg7[%c0_10, %c0_11] : memref<16x512xf32, #tpu.memory_space<vmem>>, vector<16x512xf32>
      %c0_12 = arith.constant 0 : index
      %c0_13 = arith.constant 0 : index
      %13 = vector.load %arg5[%c0_12, %c0_13] : memref<1x512xf32, #tpu.memory_space<vmem>>, vector<1x512xf32>
      %14 = vector.broadcast %13 : vector<1x512xf32> to vector<16x512xf32>
      %15 = arith.addf %12, %14 : vector<16x512xf32>
      %cst_14 = arith.constant 0.000000e+00 : f32
      %16 = vector.broadcast %cst_14 : f32 to vector<16x512xf32>
      %17 = arith.maximumf %15, %16 : vector<16x512xf32>
      %18 = arith.truncf %17 : vector<16x512xf32> to vector<16x512xbf16>
      %c0_15 = arith.constant 0 : index
      %c0_16 = arith.constant 0 : index
      %19 = vector.load %arg6[%c0_15, %c0_16] : memref<16x512xbf16, #tpu.memory_space<vmem>>, vector<16x512xbf16>
      tpu.vector_store %arg6[%c0_15, %c0_16], %18 {strides = array<i32>} : memref<16x512xbf16, #tpu.memory_space<vmem>>, vector<16x512xbf16>,
    } else {
    }
    return
  }
  func.func @transform_0(%arg0: i32, %arg1: i32, %arg2: i32) -> (i32, i32) {
    %c0_i32 = arith.constant 0 : i32
    return %arg0, %arg2 : i32, i32
  }
  func.func @transform_1(%arg0: i32, %arg1: i32, %arg2: i32) -> (i32, i32) {
    %c0_i32 = arith.constant 0 : i32
    return %arg2, %arg1 : i32, i32
  }
  func.func @transform_2(%arg0: i32, %arg1: i32, %arg2: i32) -> (i32, i32) {
    %c0_i32 = arith.constant 0 : i32
    %c0_i32_0 = arith.constant 0 : i32
    return %c0_i32, %arg1 : i32, i32
  }
  func.func @transform_3(%arg0: i32, %arg1: i32, %arg2: i32) -> (i32, i32) {
    %c0_i32 = arith.constant 0 : i32
    return %arg0, %arg1 : i32, i32
  }
}

module attributes {stable_mosaic.version = 11 : i64} {
  func.func @_linear_relu_kernel(%arg0: i32, %arg1: i32, %arg2: i32, %arg3: memref<16x512xbf16, #tpu.memory_space<vmem>>, %arg4: memref<512x512xbf16, #tpu.memory_space<vmem>>, %arg5: memref<1x512xf32, #tpu.memory_space<vmem>>, %arg6: memref<16x512xf32, #tpu.memory_space<vmem>>, %arg7: memref<16x512xf32, #tpu.memory_space<vmem>>) attributes {dimension_semantics = [#tpu.dimension_semantics<parallel>, #tpu.dimension_semantics<parallel>, #tpu.dimension_semantics<arbitrary>], iteration_bounds = array<i64: 1, 1, 1>, scalar_prefetch = 0 : i64, scratch_operands = 1 : i64, tpu.core_type = #tpu.core_type<tc>, window_params = [{transform_indices = @transform_0, window_bounds = array<i64: 16, 512>}, {transform_indices = @transform_1, window_bounds = array<i64: 512, 512>}, {transform_indices = @transform_2, window_bounds = array<i64: 1, 512>}, {transform_indices = @transform_3, window_bounds = array<i64: 16, 512>}]} {
    %c0_i32 = arith.constant 0 : i32
    %0 = arith.cmpi eq, %arg2, %c0_i32 : i32
    %1 = arith.extui %0 : i1 to i32
    %c0_i32_0 = arith.constant 0 : i32
    %2 = arith.cmpi ne, %1, %c0_i32_0 : i32
    scf.if %2 {
      %cst_10 = arith.constant 0.000000e+00 : f32
      %12 = vector.broadcast %cst_10 : f32 to vector<16x512xf32>
      %c0_11 = arith.constant 0 : index
      %c0_12 = arith.constant 0 : index
      %13 = vector.load %arg7[%c0_11, %c0_12] : memref<16x512xf32, #tpu.memory_space<vmem>>, vector<16x512xf32>
      tpu.vector_store %arg7[%c0_11, %c0_12], %12 {strides = array<i32>} : memref<16x512xf32, #tpu.memory_space<vmem>>, vector<16x512xf32>,
    } else {
    }
    %c0 = arith.constant 0 : index
    %c0_1 = arith.constant 0 : index
    %3 = vector.load %arg7[%c0, %c0_1] : memref<16x512xf32, #tpu.memory_space<vmem>>, vector<16x512xf32>
    %c0_2 = arith.constant 0 : index
    %c0_3 = arith.constant 0 : index
    %4 = vector.load %arg3[%c0_2, %c0_3] : memref<16x512xbf16, #tpu.memory_space<vmem>>, vector<16x512xbf16>
    %c0_4 = arith.constant 0 : index
    %c0_5 = arith.constant 0 : index
    %5 = vector.load %arg4[%c0_4, %c0_5] : memref<512x512xbf16, #tpu.memory_space<vmem>>, vector<512x512xbf16>
    %cst = arith.constant dense<0.000000e+00> : vector<16x512xf32>
    %6 = tpu.matmul %4, %5, %cst {dimension_numbers = #tpu.dot_dimension_numbers<[1], [0], [0], [1], [0, 0, 1, 1], [], []>} : vector<16x512xbf16>, vector<512x512xbf16>, vector<16x512xf32> -> vector<16x512xf32>
    %7 = arith.addf %3, %6 : vector<16x512xf32>
    %c0_6 = arith.constant 0 : index
    %c0_7 = arith.constant 0 : index
    %8 = vector.load %arg7[%c0_6, %c0_7] : memref<16x512xf32, #tpu.memory_space<vmem>>, vector<16x512xf32>
    tpu.vector_store %arg7[%c0_6, %c0_7], %7 {strides = array<i32>} : memref<16x512xf32, #tpu.memory_space<vmem>>, vector<16x512xf32>,
    %c0_i32_8 = arith.constant 0 : i32
    %9 = arith.cmpi eq, %arg2, %c0_i32_8 : i32
    %10 = arith.extui %9 : i1 to i32
    %c0_i32_9 = arith.constant 0 : i32
    %11 = arith.cmpi ne, %10, %c0_i32_9 : i32
    scf.if %11 {
      %c0_10 = arith.constant 0 : index
      %c0_11 = arith.constant 0 : index
      %12 = vector.load %arg7[%c0_10, %c0_11] : memref<16x512xf32, #tpu.memory_space<vmem>>, vector<16x512xf32>
      %c0_12 = arith.constant 0 : index
      %c0_13 = arith.constant 0 : index
      %13 = vector.load %arg5[%c0_12, %c0_13] : memref<1x512xf32, #tpu.memory_space<vmem>>, vector<1x512xf32>
      %14 = vector.broadcast %13 : vector<1x512xf32> to vector<16x512xf32>
      %15 = arith.addf %12, %14 : vector<16x512xf32>
      %cst_14 = arith.constant 0.000000e+00 : f32
      %16 = vector.broadcast %cst_14 : f32 to vector<16x512xf32>
      %17 = arith.maximumf %15, %16 : vector<16x512xf32>
      %c0_15 = arith.constant 0 : index
      %c0_16 = arith.constant 0 : index
      %18 = vector.load %arg6[%c0_15, %c0_16] : memref<16x512xf32, #tpu.memory_space<vmem>>, vector<16x512xf32>
      tpu.vector_store %arg6[%c0_15, %c0_16], %17 {strides = array<i32>} : memref<16x512xf32, #tpu.memory_space<vmem>>, vector<16x512xf32>,
    } else {
    }
    return
  }
  func.func @transform_0(%arg0: i32, %arg1: i32, %arg2: i32) -> (i32, i32) {
    %c0_i32 = arith.constant 0 : i32
    return %arg0, %arg2 : i32, i32
  }
  func.func @transform_1(%arg0: i32, %arg1: i32, %arg2: i32) -> (i32, i32) {
    %c0_i32 = arith.constant 0 : i32
    return %arg2, %arg1 : i32, i32
  }
  func.func @transform_2(%arg0: i32, %arg1: i32, %arg2: i32) -> (i32, i32) {
    %c0_i32 = arith.constant 0 : i32
    %c0_i32_0 = arith.constant 0 : i32
    return %c0_i32, %arg1 : i32, i32
  }
  func.func @transform_3(%arg0: i32, %arg1: i32, %arg2: i32) -> (i32, i32) {
    %c0_i32 = arith.constant 0 : i32
    return %arg0, %arg1 : i32, i32
  }
}

</mosaic_0001>

<bundles_post_ra>
// kernel: vgg_classifier_forward.3
= control target key start
LH: loop header
LB: loop body
LE: loop exit
PB: predicated region body
PF: predicated region fallthrough
CT: control target
= control target key end

     0   :  { %s1856_s1 = inlined_call_operand.vmem [shape: bf16[512,512], index: 1, kind: input, shape index: {}]   ;;  %s1857_s0 = inlined_call_operand.vmem [shape: bf16[16,512], index: 0, kind: input, shape index: {}]   ;;  %s1858_s2 = inlined_call_operand.vmem [shape: f32[1,512], index: 2, kind: input, shape index: {}]   ;;  %s1859_s3 = inlined_call_operand.vmem [shape: f32[16,512], index: 3, kind: output, shape index: {}]  }
   0x1   :  { %v1207_v0 = vld [vmem:[%s1856_s1 + $0xe4] ss:$16 sps:$4 sm:$0xff]   ;;  %v1211_v2 = vld [vmem:[%s1856_s1 + $0xe0] ss:$16 sps:$4 sm:$0xff]   ;;  %v1308_v51 = vld [vmem:[%s1857_s0 + $0xc] ss:$16 sps:$4 sm:$0xff]  }
   0x2   :  { %v1209_v1 = vld [vmem:[%s1856_s1 + $0x2e4] ss:$16 sps:$4 sm:$0xff]   ;;  %826 = vmatprep.subr.bf16.mxu0 %v1207_v0  ;;  %v1212_v3 = vld [vmem:[%s1856_s1 + $0x2e0] ss:$16 sps:$4 sm:$0xff]   ;;  %901 = vmatprep.mubr.bf16.mxu1 %v1308_v51 }
   0x3   :  { %869 = vmatprep.subr.bf16.mxu1 %v1209_v1  ;;  %v1213_v4 = vld [vmem:[%s1856_s1 + $0xc4] ss:$16 sps:$4 sm:$0xff]   ;;  %827 = vmatpush1.bf16.msra.mxu0 %v1211_v2  ;;  %v1217_v6 = vld [vmem:[%s1856_s1 + $0xc0] ss:$16 sps:$4 sm:$0xff]   ;;  %v1311_v2 = vld [vmem:[%s1856_s1 + $0xec] ss:$16 sps:$4 sm:$0xff]  }
   0x4   :  { %870 = vmatpush1.bf16.msra.mxu1 %v1212_v3  ;;  %v1215_v5 = vld [vmem:[%s1856_s1 + $0x2c4] ss:$16 sps:$4 sm:$0xff]   ;;  %828 = vmatprep.subr.bf16.mxu0 %v1213_v4  ;;  %v1218_v7 = vld [vmem:[%s1856_s1 + $0x2c0] ss:$16 sps:$4 sm:$0xff]   ;;  %v1314_v3 = vld [vmem:[%s1856_s1 + $0x2ec] ss:$16 sps:$4 sm:$0xff]  }
   0x5   :  { %871 = vmatprep.subr.bf16.mxu1 %v1215_v5  ;;  %v1219_v8 = vld [vmem:[%s1856_s1 + $0xa4] ss:$16 sps:$4 sm:$0xff]   ;;  %v1223_v10 = vld [vmem:[%s1856_s1 + $0xa0] ss:$16 sps:$4 sm:$0xff]   ;;  %v1637_v5 = vld [vmem:[%s1857_s0 + $0x8] ss:$16 sps:$4 sm:$0xff]  }
   0x6   :  { %v1221_v9 = vld [vmem:[%s1856_s1 + $0x2a4] ss:$16 sps:$4 sm:$0xff]   ;;  %v1224_v11 = vld [vmem:[%s1856_s1 + $0x2a0] ss:$16 sps:$4 sm:$0xff]  }
   0x7   :  { %829 = vmatpush1.bf16.msra.mxu0 %v1217_v6  ;;  %v1225_v12 = vld [vmem:[%s1856_s1 + $0x84] ss:$16 sps:$4 sm:$0xff]   ;;  %v1229_v14 = vld [vmem:[%s1856_s1 + $0x80] ss:$16 sps:$4 sm:$0xff]   ;;  %v1309_v6 = vld [vmem:[%s1856_s1 + $0xe8] ss:$16 sps:$4 sm:$0xff]  }
   0x8   :  { %872 = vmatpush1.bf16.msra.mxu1 %v1218_v7  ;;  %830 = vmatprep.subr.bf16.mxu0 %v1219_v8  ;;  %v1227_v13 = vld [vmem:[%s1856_s1 + $0x284] ss:$16 sps:$4 sm:$0xff]   ;;  %v1230_v15 = vld [vmem:[%s1856_s1 + $0x280] ss:$16 sps:$4 sm:$0xff]   ;;  %v1312_v7 = vld [vmem:[%s1856_s1 + $0x2e8] ss:$16 sps:$4 sm:$0xff]  }
   0x9   :  { %873 = vmatprep.subr.bf16.mxu1 %v1221_v9  ;;  %v1231_v16 = vld [vmem:[%s1856_s1 + $0x64] ss:$16 sps:$4 sm:$0xff]   ;;  %v1235_v18 = vld [vmem:[%s1856_s1 + $0x60] ss:$16 sps:$4 sm:$0xff]   ;;  %v1317_v8 = vld [vmem:[%s1856_s1 + $0xcc] ss:$16 sps:$4 sm:$0xff]  }
   0xa   :  { %v1233_v17 = vld [vmem:[%s1856_s1 + $0x264] ss:$16 sps:$4 sm:$0xff]   ;;  %v1236_v19 = vld [vmem:[%s1856_s1 + $0x260] ss:$16 sps:$4 sm:$0xff]   ;;  %v1320_v9 = vld [vmem:[%s1856_s1 + $0x2cc] ss:$16 sps:$4 sm:$0xff]  }
   0xb   :  { %831 = vmatpush1.bf16.msra.mxu0 %v1223_v10  ;;  %v1237_v20 = vld [vmem:[%s1856_s1 + $0x44] ss:$16 sps:$4 sm:$0xff]   ;;  %v1241_v22 = vld [vmem:[%s1856_s1 + $0x40] ss:$16 sps:$4 sm:$0xff]   ;;  %v1315_v10 = vld [vmem:[%s1856_s1 + $0xc8] ss:$16 sps:$4 sm:$0xff]  }
   0xc   :  { %874 = vmatpush1.bf16.msra.mxu1 %v1224_v11  ;;  %832 = vmatprep.subr.bf16.mxu0 %v1225_v12  ;;  %v1239_v21 = vld [vmem:[%s1856_s1 + $0x244] ss:$16 sps:$4 sm:$0xff]   ;;  %v1242_v23 = vld [vmem:[%s1856_s1 + $0x240] ss:$16 sps:$4 sm:$0xff]   ;;  %v1318_v11 = vld [vmem:[%s1856_s1 + $0x2c8] ss:$16 sps:$4 sm:$0xff]  }
   0xd   :  { %875 = vmatprep.subr.bf16.mxu1 %v1227_v13  ;;  %v1243_v24 = vld [vmem:[%s1856_s1 + $0x24] ss:$16 sps:$4 sm:$0xff]   ;;  %v1247_v26 = vld [vmem:[%s1856_s1 + $0x20] ss:$16 sps:$4 sm:$0xff]   ;;  %v1323_v12 = vld [vmem:[%s1856_s1 + $0xac] ss:$16 sps:$4 sm:$0xff]  }
   0xe   :  { %v1245_v25 = vld [vmem:[%s1856_s1 + $0x224] ss:$16 sps:$4 sm:$0xff]   ;;  %v1248_v27 = vld [vmem:[%s1856_s1 + $0x220] ss:$16 sps:$4 sm:$0xff]   ;;  %v1326_v13 = vld [vmem:[%s1856_s1 + $0x2ac] ss:$16 sps:$4 sm:$0xff]  }
   0xf   :  { %833 = vmatpush1.bf16.msra.mxu0 %v1229_v14  ;;  %v1249_v28 = vld [vmem:[%s1856_s1 + $0x4] ss:$16 sps:$4 sm:$0xff]   ;;  %v1253_v30 = vld [vmem:[%s1856_s1] ss:$16 sps:$4 sm:$0xff]   ;;  %v1321_v14 = vld [vmem:[%s1856_s1 + $0xa8] ss:$16 sps:$4 sm:$0xff]  }
  0x10   :  { %876 = vmatpush1.bf16.msra.mxu1 %v1230_v15  ;;  %834 = vmatprep.subr.bf16.mxu0 %v1231_v16  ;;  %v1251_v29 = vld [vmem:[%s1856_s1 + $0x204] ss:$16 sps:$4 sm:$0xff]   ;;  %v1254_v31 = vld [vmem:[%s1856_s1 + $0x200] ss:$16 sps:$4 sm:$0xff]   ;;  %v1324_v15 = vld [vmem:[%s1856_s1 + $0x2a8] ss:$16 sps:$4 sm:$0xff]  }
  0x11   :  { %877 = vmatprep.subr.bf16.mxu1 %v1233_v17  ;;  %v1255_v32 = vld [vmem:[%s1856_s1 + $0x1e4] ss:$16 sps:$4 sm:$0xff]   ;;  %v1259_v34 = vld [vmem:[%s1856_s1 + $0x1e0] ss:$16 sps:$4 sm:$0xff]   ;;  %v1329_v16 = vld [vmem:[%s1856_s1 + $0x8c] ss:$16 sps:$4 sm:$0xff]  }
  0x12   :  { %v1257_v33 = vld [vmem:[%s1856_s1 + $0x3e4] ss:$16 sps:$4 sm:$0xff]   ;;  %v1260_v35 = vld [vmem:[%s1856_s1 + $0x3e0] ss:$16 sps:$4 sm:$0xff]   ;;  %v1332_v17 = vld [vmem:[%s1856_s1 + $0x28c] ss:$16 sps:$4 sm:$0xff]  }
  0x13   :  { %835 = vmatpush1.bf16.msra.mxu0 %v1235_v18  ;;  %v1261_v36 = vld [vmem:[%s1856_s1 + $0x1c4] ss:$16 sps:$4 sm:$0xff]   ;;  %v1265_v38 = vld [vmem:[%s1856_s1 + $0x1c0] ss:$16 sps:$4 sm:$0xff]   ;;  %v1327_v18 = vld [vmem:[%s1856_s1 + $0x88] ss:$16 sps:$4 sm:$0xff]  }
  0x14   :  { %878 = vmatpush1.bf16.msra.mxu1 %v1236_v19  ;;  %836 = vmatprep.subr.bf16.mxu0 %v1237_v20  ;;  %v1263_v37 = vld [vmem:[%s1856_s1 + $0x3c4] ss:$16 sps:$4 sm:$0xff]   ;;  %v1266_v39 = vld [vmem:[%s1856_s1 + $0x3c0] ss:$16 sps:$4 sm:$0xff]   ;;  %v1330_v19 = vld [vmem:[%s1856_s1 + $0x288] ss:$16 sps:$4 sm:$0xff]  }
  0x15   :  { %879 = vmatprep.subr.bf16.mxu1 %v1239_v21  ;;  %v1267_v40 = vld [vmem:[%s1856_s1 + $0x1a4] ss:$16 sps:$4 sm:$0xff]   ;;  %v1271_v42 = vld [vmem:[%s1856_s1 + $0x1a0] ss:$16 sps:$4 sm:$0xff]   ;;  %v1335_v20 = vld [vmem:[%s1856_s1 + $0x6c] ss:$16 sps:$4 sm:$0xff]  }
  0x16   :  { %v1269_v41 = vld [vmem:[%s1856_s1 + $0x3a4] ss:$16 sps:$4 sm:$0xff]   ;;  %v1272_v43 = vld [vmem:[%s1856_s1 + $0x3a0] ss:$16 sps:$4 sm:$0xff]   ;;  %v1338_v21 = vld [vmem:[%s1856_s1 + $0x26c] ss:$16 sps:$4 sm:$0xff]  }
  0x17   :  { %837 = vmatpush1.bf16.msra.mxu0 %v1241_v22  ;;  %v1273_v44 = vld [vmem:[%s1856_s1 + $0x184] ss:$16 sps:$4 sm:$0xff]   ;;  %v1277_v46 = vld [vmem:[%s1856_s1 + $0x180] ss:$16 sps:$4 sm:$0xff]   ;;  %v1333_v22 = vld [vmem:[%s1856_s1 + $0x68] ss:$16 sps:$4 sm:$0xff]  }
  0x18   :  { %880 = vmatpush1.bf16.msra.mxu1 %v1242_v23  ;;  %838 = vmatprep.subr.bf16.mxu0 %v1243_v24  ;;  %v1275_v45 = vld [vmem:[%s1856_s1 + $0x384] ss:$16 sps:$4 sm:$0xff]   ;;  %v1278_v47 = vld [vmem:[%s1856_s1 + $0x380] ss:$16 sps:$4 sm:$0xff]   ;;  %v1336_v23 = vld [vmem:[%s1856_s1 + $0x268] ss:$16 sps:$4 sm:$0xff]  }
  0x19   :  { %881 = vmatprep.subr.bf16.mxu1 %v1245_v25  ;;  %v1279_v48 = vld [vmem:[%s1856_s1 + $0x164] ss:$16 sps:$4 sm:$0xff]   ;;  %v1283_v52 = vld [vmem:[%s1856_s1 + $0x160] ss:$16 sps:$4 sm:$0xff]   ;;  %v1341_v24 = vld [vmem:[%s1856_s1 + $0x4c] ss:$16 sps:$4 sm:$0xff]  }
  0x1a   :  { %v1305_v49 = vld [vmem:[%s1857_s0 + $0x4] ss:$16 sps:$4 sm:$0xff]   ;;  %v1284_v53 = vld [vmem:[%s1856_s1 + $0x360] ss:$16 sps:$4 sm:$0xff]   ;;  %v1344_v25 = vld [vmem:[%s1856_s1 + $0x24c] ss:$16 sps:$4 sm:$0xff]  }
  0x1b   :  { %839 = vmatpush1.bf16.msra.mxu0 %v1247_v26  ;;  %v1281_v50 = vld [vmem:[%s1856_s1 + $0x364] ss:$16 sps:$4 sm:$0xff]   ;;  %858 = vmatprep.mubr.bf16.mxu0 %v1305_v49  ;;  %v1289_v56 = vld [vmem:[%s1856_s1 + $0x140] ss:$16 sps:$4 sm:$0xff]   ;;  %v1339_v26 = vld [vmem:[%s1856_s1 + $0x48] ss:$16 sps:$4 sm:$0xff]  }
  0x1c   :  { %882 = vmatpush1.bf16.msra.mxu1 %v1248_v27  ;;  %840 = vmatprep.subr.bf16.mxu0 %v1249_v28  ;;  %v1285_v54 = vld [vmem:[%s1856_s1 + $0x144] ss:$16 sps:$4 sm:$0xff]   ;;  %v1290_v57 = vld [vmem:[%s1856_s1 + $0x340] ss:$16 sps:$4 sm:$0xff]   ;;  %v1342_v27 = vld [vmem:[%s1856_s1 + $0x248] ss:$16 sps:$4 sm:$0xff]  }
  0x1d   :  { %883 = vmatprep.subr.bf16.mxu1 %v1251_v29  ;;  %v1287_v55 = vld [vmem:[%s1856_s1 + $0x344] ss:$16 sps:$4 sm:$0xff]   ;;  %v1295_v60 = vld [vmem:[%s1856_s1 + $0x120] ss:$16 sps:$4 sm:$0xff]   ;;  %v1347_v28 = vld [vmem:[%s1856_s1 + $0x2c] ss:$16 sps:$4 sm:$0xff]  }
  0x1e   :  { %v1291_v58 = vld [vmem:[%s1856_s1 + $0x124] ss:$16 sps:$4 sm:$0xff]   ;;  %v1296_v61 = vld [vmem:[%s1856_s1 + $0x320] ss:$16 sps:$4 sm:$0xff]   ;;  %v1350_v29 = vld [vmem:[%s1856_s1 + $0x22c] ss:$16 sps:$4 sm:$0xff]  }
  0x1f   :  { %841 = vmatpush1.bf16.msra.mxu0 %v1253_v30  ;;  %v1293_v59 = vld [vmem:[%s1856_s1 + $0x324] ss:$16 sps:$4 sm:$0xff]   ;;  %v1301_v0 = vld [vmem:[%s1856_s1 + $0x100] ss:$16 sps:$4 sm:$0xff]   ;;  %v1345_v30 = vld [vmem:[%s1856_s1 + $0x28] ss:$16 sps:$4 sm:$0xff]  }
  0x20   :  { %884 = vmatpush1.bf16.msra.mxu1 %v1254_v31  ;;  %842 = vmatprep.subr.bf16.mxu0 %v1255_v32  ;;  %v1297_v62 = vld [vmem:[%s1856_s1 + $0x104] ss:$16 sps:$4 sm:$0xff]   ;;  %v1302_v1 = vld [vmem:[%s1856_s1 + $0x300] ss:$16 sps:$4 sm:$0xff]   ;;  %v1348_v31 = vld [vmem:[%s1856_s1 + $0x228] ss:$16 sps:$4 sm:$0xff]  }
  0x21   :  { %885 = vmatprep.subr.bf16.mxu1 %v1257_v33  ;;  %v1299_v63 = vld [vmem:[%s1856_s1 + $0x304] ss:$16 sps:$4 sm:$0xff]   ;;  %v1632_v4 = vld [vmem:[%s1857_s0] ss:$16 sps:$4 sm:$0xff]   ;;  %v1353_v32 = vld [vmem:[%s1856_s1 + $0xc] ss:$16 sps:$4 sm:$0xff]  }
  0x22   :  { %v1356_v33 = vld [vmem:[%s1856_s1 + $0x20c] ss:$16 sps:$4 sm:$0xff]  }
  0x23   :  { %843 = vmatpush2.bf16.msra.mxu0 %v1259_v34  ;;  %v1351_v34 = vld [vmem:[%s1856_s1 + $0x8] ss:$16 sps:$4 sm:$0xff]  }
  0x24   :  { %886 = vmatpush2.bf16.msra.mxu1 %v1260_v35  ;;  %844 = vmatprep.subr.bf16.mxu0 %v1261_v36  ;;  %v1354_v35 = vld [vmem:[%s1856_s1 + $0x208] ss:$16 sps:$4 sm:$0xff]   ;;  %v1359_v36 = vld [vmem:[%s1856_s1 + $0x1ec] ss:$16 sps:$4 sm:$0xff]  }
  0x25   :  { %887 = vmatprep.subr.bf16.mxu1 %v1263_v37  ;;  %v1362_v37 = vld [vmem:[%s1856_s1 + $0x3ec] ss:$16 sps:$4 sm:$0xff]  }
  0x27   :  { %845 = vmatpush2.bf16.msra.mxu0 %v1265_v38  ;;  %v1357_v38 = vld [vmem:[%s1856_s1 + $0x1e8] ss:$16 sps:$4 sm:$0xff]  }
  0x28   :  { %888 = vmatpush2.bf16.msra.mxu1 %v1266_v39  ;;  %846 = vmatprep.subr.bf16.mxu0 %v1267_v40  ;;  %v1360_v39 = vld [vmem:[%s1856_s1 + $0x3e8] ss:$16 sps:$4 sm:$0xff]   ;;  %v1365_v40 = vld [vmem:[%s1856_s1 + $0x1cc] ss:$16 sps:$4 sm:$0xff]  }
  0x29   :  { %889 = vmatprep.subr.bf16.mxu1 %v1269_v41  ;;  %v1368_v41 = vld [vmem:[%s1856_s1 + $0x3cc] ss:$16 sps:$4 sm:$0xff]  }
  0x2b   :  { %847 = vmatpush2.bf16.msra.mxu0 %v1271_v42  ;;  %v1363_v42 = vld [vmem:[%s1856_s1 + $0x1c8] ss:$16 sps:$4 sm:$0xff]  }
  0x2c   :  { %890 = vmatpush2.bf16.msra.mxu1 %v1272_v43  ;;  %848 = vmatprep.subr.bf16.mxu0 %v1273_v44  ;;  %v1366_v43 = vld [vmem:[%s1856_s1 + $0x3c8] ss:$16 sps:$4 sm:$0xff]   ;;  %v1371_v44 = vld [vmem:[%s1856_s1 + $0x1ac] ss:$16 sps:$4 sm:$0xff]  }
  0x2d   :  { %891 = vmatprep.subr.bf16.mxu1 %v1275_v45  ;;  %v1374_v45 = vld [vmem:[%s1856_s1 + $0x3ac] ss:$16 sps:$4 sm:$0xff]  }
  0x2f   :  { %849 = vmatpush2.bf16.msra.mxu0 %v1277_v46  ;;  %v1369_v46 = vld [vmem:[%s1856_s1 + $0x1a8] ss:$16 sps:$4 sm:$0xff]  }
  0x30   :  { %892 = vmatpush2.bf16.msra.mxu1 %v1278_v47  ;;  %850 = vmatprep.subr.bf16.mxu0 %v1279_v48  ;;  %v1372_v47 = vld [vmem:[%s1856_s1 + $0x3a8] ss:$16 sps:$4 sm:$0xff]   ;;  %v1377_v48 = vld [vmem:[%s1856_s1 + $0x18c] ss:$16 sps:$4 sm:$0xff]  }
  0x31   :  { %893 = vmatprep.subr.bf16.mxu1 %v1281_v50  ;;  %v1375_v50 = vld [vmem:[%s1856_s1 + $0x188] ss:$16 sps:$4 sm:$0xff]  }
  0x33   :  { %851 = vmatpush2.bf16.msra.mxu0 %v1283_v52  ;;  %v1383_v52 = vld [vmem:[%s1856_s1 + $0x16c] ss:$16 sps:$4 sm:$0xff]  }
  0x34   :  { %894 = vmatpush2.bf16.msra.mxu1 %v1284_v53  ;;  %852 = vmatprep.subr.bf16.mxu0 %v1285_v54  ;;  %v1386_v53 = vld [vmem:[%s1856_s1 + $0x36c] ss:$16 sps:$4 sm:$0xff]   ;;  %v1381_v54 = vld [vmem:[%s1856_s1 + $0x168] ss:$16 sps:$4 sm:$0xff]  }
  0x35   :  { %895 = vmatprep.subr.bf16.mxu1 %v1287_v55  ;;  %v1384_v55 = vld [vmem:[%s1856_s1 + $0x368] ss:$16 sps:$4 sm:$0xff]  }
  0x37   :  { %853 = vmatpush2.bf16.msra.mxu0 %v1289_v56  ;;  %v1389_v56 = vld [vmem:[%s1856_s1 + $0x14c] ss:$16 sps:$4 sm:$0xff]  }
  0x38   :  { %896 = vmatpush2.bf16.msra.mxu1 %v1290_v57  ;;  %854 = vmatprep.subr.bf16.mxu0 %v1291_v58  ;;  %v1392_v57 = vld [vmem:[%s1856_s1 + $0x34c] ss:$16 sps:$4 sm:$0xff]   ;;  %v1387_v58 = vld [vmem:[%s1856_s1 + $0x148] ss:$16 sps:$4 sm:$0xff]  }
  0x39   :  { %897 = vmatprep.subr.bf16.mxu1 %v1293_v59  ;;  %v1390_v59 = vld [vmem:[%s1856_s1 + $0x348] ss:$16 sps:$4 sm:$0xff]  }
  0x3b   :  { %855 = vmatpush2.bf16.msra.mxu0 %v1295_v60  ;;  %v1395_v60 = vld [vmem:[%s1856_s1 + $0x12c] ss:$16 sps:$4 sm:$0xff]  }
  0x3c   :  { %898 = vmatpush2.bf16.msra.mxu1 %v1296_v61  ;;  %856 = vmatprep.subr.bf16.mxu0 %v1297_v62  ;;  %v1398_v61 = vld [vmem:[%s1856_s1 + $0x32c] ss:$16 sps:$4 sm:$0xff]   ;;  %v1393_v62 = vld [vmem:[%s1856_s1 + $0x128] ss:$16 sps:$4 sm:$0xff]  }
  0x3d   :  { %899 = vmatprep.subr.bf16.mxu1 %v1299_v63  ;;  %v1396_v63 = vld [vmem:[%s1856_s1 + $0x328] ss:$16 sps:$4 sm:$0xff]  }
  0x3f   :  { %857 = vmatpush2.bf16.msra.mxu0 %v1301_v0  ;;  %v1401_v0 = vld [vmem:[%s1856_s1 + $0x10c] ss:$16 sps:$4 sm:$0xff]  }
  0x40   :  { %900 = vmatpush2.bf16.msra.mxu1 %v1302_v1  ;;  %912 = vmatprep.subr.bf16.mxu0 %v1311_v2  ;;  %v1404_v1 = vld [vmem:[%s1856_s1 + $0x30c] ss:$16 sps:$4 sm:$0xff]   ;;  %v1399_v2 = vld [vmem:[%s1856_s1 + $0x108] ss:$16 sps:$4 sm:$0xff]  }
  0x41   :  { %955 = vmatprep.subr.bf16.mxu1 %v1314_v3  ;;  %v1402_v3 = vld [vmem:[%s1856_s1 + $0x308] ss:$16 sps:$4 sm:$0xff]  }
  0x42   :  { %859 = vmatmul.mubr.bf16.vlgmr.msra.gmra.mxu0 %v1632_v4 }
  0x43   :  { %902 = vmatmul.mubr.bf16.vlgmr.msra.gmra.mxu1 %v1637_v5  ;;  %913 = vmatpush1.bf16.msra.mxu0 %v1309_v6  ;;  %v1027_v6 = vlaneseq }
  0x44   :  { %956 = vmatpush1.bf16.msra.mxu1 %v1312_v7  ;;  %914 = vmatprep.subr.bf16.mxu0 %v1317_v8 }
  0x45   :  { %957 = vmatprep.subr.bf16.mxu1 %v1320_v9  ;;  %944 = vmatprep.mubr.bf16.mxu0 %v1305_v49  ;;  %v1380_v49 = vld [vmem:[%s1856_s1 + $0x38c] ss:$16 sps:$4 sm:$0xff]   ;;  %v1028_v7 = vshrl.u32 %v1027_v6, 7  ;;  %v1025_v9 = vld [vmem:[%s1858_s2] sm:$0xf] }
  0x46   :  { %987 = vmatprep.mubr.bf16.mxu1 %v1308_v51  ;;  %v1378_v51 = vld [vmem:[%s1856_s1 + $0x388] ss:$16 sps:$4 sm:$0xff]  }
  0x47   :  { %915 = vmatpush1.bf16.msra.mxu0 %v1315_v10  ;;  %v1029_v8 = vsub.s32 0, %v1028_v7  ;;  %v1033_v10 = vsub.s32 1, %v1028_v7 }
  0x48   :  { %958 = vmatpush1.bf16.msra.mxu1 %v1318_v11  ;;  %916 = vmatprep.subr.bf16.mxu0 %v1323_v12 }
  0x49   :  { %959 = vmatprep.subr.bf16.mxu1 %v1326_v13  ;;  %v1030_v11 = vrot.slane %v1025_v9, %v1029_v8 }
  0x4b   :  { %917 = vmatpush1.bf16.msra.mxu0 %v1321_v14 }
  0x4c   :  { %960 = vmatpush1.bf16.msra.mxu1 %v1324_v15  ;;  %918 = vmatprep.subr.bf16.mxu0 %v1329_v16  ;;  %v1034_v15 = vrot.slane %v1025_v9, %v1033_v10 }
  0x4d   :  { %961 = vmatprep.subr.bf16.mxu1 %v1332_v17 }
  0x4f   :  { %919 = vmatpush1.bf16.msra.mxu0 %v1327_v18 }
  0x50   :  { %962 = vmatpush1.bf16.msra.mxu1 %v1330_v19  ;;  %920 = vmatprep.subr.bf16.mxu0 %v1335_v20 }
  0x51   :  { %963 = vmatprep.subr.bf16.mxu1 %v1338_v21 }
  0x53   :  { %921 = vmatpush1.bf16.msra.mxu0 %v1333_v22 }
  0x54   :  { %964 = vmatpush1.bf16.msra.mxu1 %v1336_v23  ;;  %922 = vmatprep.subr.bf16.mxu0 %v1341_v24 }
  0x55   :  { %965 = vmatprep.subr.bf16.mxu1 %v1344_v25 }
  0x57   :  { %923 = vmatpush1.bf16.msra.mxu0 %v1339_v26 }
  0x58   :  { %966 = vmatpush1.bf16.msra.mxu1 %v1342_v27  ;;  %924 = vmatprep.subr.bf16.mxu0 %v1347_v28 }
  0x59   :  { %967 = vmatprep.subr.bf16.mxu1 %v1350_v29 }
  0x5b   :  { %925 = vmatpush1.bf16.msra.mxu0 %v1345_v30 }
  0x5c   :  { %968 = vmatpush1.bf16.msra.mxu1 %v1348_v31  ;;  %926 = vmatprep.subr.bf16.mxu0 %v1353_v32  ;;  %v1037_v31 = vsub.s32 2, %v1028_v7  ;;  %v1041_v32 = vsub.s32 3, %v1028_v7 }
  0x5d   :  { %969 = vmatprep.subr.bf16.mxu1 %v1356_v33 }
  0x5e   :  { %v1038_v33 = vrot.slane %v1025_v9, %v1037_v31 }
  0x5f   :  { %927 = vmatpush1.bf16.msra.mxu0 %v1351_v34 }
  0x60   :  { %970 = vmatpush1.bf16.msra.mxu1 %v1354_v35  ;;  %928 = vmatprep.subr.bf16.mxu0 %v1359_v36 }
  0x61   :  { %971 = vmatprep.subr.bf16.mxu1 %v1362_v37  ;;  %v1042_v37 = vrot.slane %v1025_v9, %v1041_v32 }
  0x63   :  { %929 = vmatpush2.bf16.msra.mxu0 %v1357_v38 }
  0x64   :  { %972 = vmatpush2.bf16.msra.mxu1 %v1360_v39  ;;  %930 = vmatprep.subr.bf16.mxu0 %v1365_v40 }
  0x65   :  { %973 = vmatprep.subr.bf16.mxu1 %v1368_v41 }
  0x67   :  { %931 = vmatpush2.bf16.msra.mxu0 %v1363_v42 }
  0x68   :  { %974 = vmatpush2.bf16.msra.mxu1 %v1366_v43  ;;  %932 = vmatprep.subr.bf16.mxu0 %v1371_v44 }
  0x69   :  { %975 = vmatprep.subr.bf16.mxu1 %v1374_v45 }
  0x6b   :  { %933 = vmatpush2.bf16.msra.mxu0 %v1369_v46 }
  0x6c   :  { %976 = vmatpush2.bf16.msra.mxu1 %v1372_v47  ;;  %934 = vmatprep.subr.bf16.mxu0 %v1377_v48 }
  0x6d   :  { %977 = vmatprep.subr.bf16.mxu1 %v1380_v49 }
  0x6f   :  { %935 = vmatpush2.bf16.msra.mxu0 %v1375_v50 }
  0x70   :  { %978 = vmatpush2.bf16.msra.mxu1 %v1378_v51  ;;  %936 = vmatprep.subr.bf16.mxu0 %v1383_v52 }
  0x71   :  { %979 = vmatprep.subr.bf16.mxu1 %v1386_v53 }
  0x73   :  { %937 = vmatpush2.bf16.msra.mxu0 %v1381_v54 }
  0x74   :  { %980 = vmatpush2.bf16.msra.mxu1 %v1384_v55  ;;  %938 = vmatprep.subr.bf16.mxu0 %v1389_v56 }
  0x75   :  { %981 = vmatprep.subr.bf16.mxu1 %v1392_v57 }
  0x77   :  { %939 = vmatpush2.bf16.msra.mxu0 %v1387_v58 }
  0x78   :  { %982 = vmatpush2.bf16.msra.mxu1 %v1390_v59  ;;  %940 = vmatprep.subr.bf16.mxu0 %v1395_v60 }
  0x79   :  { %983 = vmatprep.subr.bf16.mxu1 %v1398_v61 }
  0x7b   :  { %941 = vmatpush2.bf16.msra.mxu0 %v1393_v62 }
  0x7c   :  { %984 = vmatpush2.bf16.msra.mxu1 %v1396_v63  ;;  %942 = vmatprep.subr.bf16.mxu0 %v1401_v0 }
  0x7d   :  { %985 = vmatprep.subr.bf16.mxu1 %v1404_v1 }
  0x7f   :  { %943 = vmatpush2.bf16.msra.mxu0 %v1399_v2 }
  0x80   :  { %986 = vmatpush2.bf16.msra.mxu1 %v1402_v3 }
  0x82   :  { %945 = vmatmul.mubr.bf16.vlgmr.msra.gmra.mxu0 %v1632_v4 }
  0x83   :  { %988 = vmatmul.mubr.bf16.vlgmr.msra.gmra.mxu1 %v1637_v5 }
 0x102   :  { %v860_v12 = vpop.f32.mrf.mxu0 }
 0x103   :  { %v903_v13 = vpop.f32.mrf.mxu1 }
 0x104   :  { %v904_v14 = vadd.f32 %v903_v13, %v860_v12  ;;  %v862_v16 = vpop.f32.mrf.mxu0 }
 0x105   :  { %v905_v17 = vpop.f32.mrf.mxu1 }
 0x106   :  { %v1047_v18 = vadd.f32 %v1030_v11, %v904_v14  ;;  %v906_v19 = vadd.f32 %v905_v17, %v862_v16  ;;  %v864_v4 = vpop.f32.mrf.mxu0 }
 0x107   :  { %v907_v20 = vpop.f32.mrf.mxu1 }
 0x108   :  { %v1055_v5 = vmax.f32 %v1047_v18, 0.0  ;;  %v1048_v21 = vadd.f32 %v1034_v15, %v906_v19  ;;  %v908_v22 = vadd.f32 %v907_v20, %v864_v4  ;;  %v866_v23 = vpop.f32.mrf.mxu0 }
 0x109   :  { %v909_v24 = vpop.f32.mrf.mxu1 }
 0x10a   :  { %1063 = vst [vmem:[%s1859_s3] sm:$0xff] %v1055_v5  ;;  %v1056_v25 = vmax.f32 %v1048_v21, 0.0  ;;  %v1051_v26 = vadd.f32 %v1030_v11, %v908_v22  ;;  %v910_v27 = vadd.f32 %v909_v24, %v866_v23 }
 0x10c   :  { %1064 = vst [vmem:[%s1859_s3 + $0x8] sm:$0xff] %v1056_v25  ;;  %v1059_v28 = vmax.f32 %v1051_v26, 0.0  ;;  %v1052_v29 = vadd.f32 %v1034_v15, %v910_v27 }
 0x10e   :  { %1067 = vst [vmem:[%s1859_s3 + $0x20] sm:$0xff] %v1059_v28  ;;  %v1060_v30 = vmax.f32 %v1052_v29, 0.0 }
 0x110   :  { %1068 = vst [vmem:[%s1859_s3 + $0x28] sm:$0xff] %v1060_v30 }
 0x142   :  { %v946_v34 = vpop.f32.mrf.mxu0 }
 0x143   :  { %v989_v35 = vpop.f32.mrf.mxu1 }
 0x144   :  { %v990_v36 = vadd.f32 %v989_v35, %v946_v34  ;;  %v948_v38 = vpop.f32.mrf.mxu0 }
 0x145   :  { %v991_v39 = vpop.f32.mrf.mxu1 }
 0x146   :  { %v1049_v40 = vadd.f32 %v1038_v33, %v990_v36  ;;  %v992_v41 = vadd.f32 %v991_v39, %v948_v38  ;;  %v950_v42 = vpop.f32.mrf.mxu0 }
 0x147   :  { %v993_v43 = vpop.f32.mrf.mxu1 }
 0x148   :  { %v1057_v44 = vmax.f32 %v1049_v40, 0.0  ;;  %v1050_v45 = vadd.f32 %v1042_v37, %v992_v41  ;;  %v994_v46 = vadd.f32 %v993_v43, %v950_v42  ;;  %v952_v47 = vpop.f32.mrf.mxu0 }
 0x149   :  { %v995_v48 = vpop.f32.mrf.mxu1 }
 0x14a   :  { %1065 = vst [vmem:[%s1859_s3 + $0x10] sm:$0xff] %v1057_v44  ;;  %v1058_v49 = vmax.f32 %v1050_v45, 0.0  ;;  %v1053_v50 = vadd.f32 %v1038_v33, %v994_v46  ;;  %v996_v51 = vadd.f32 %v995_v48, %v952_v47 }
 0x14c   :  { %1066 = vst [vmem:[%s1859_s3 + $0x18] sm:$0xff] %v1058_v49  ;;  %v1061_v52 = vmax.f32 %v1053_v50, 0.0  ;;  %v1054_v53 = vadd.f32 %v1042_v37, %v996_v51 }
 0x14e   :  { %1069 = vst [vmem:[%s1859_s3 + $0x30] sm:$0xff] %v1061_v52  ;;  %v1062_v54 = vmax.f32 %v1054_v53, 0.0 }
 0x150   :  { %1070 = vst [vmem:[%s1859_s3 + $0x38] sm:$0xff] %v1062_v54 }

// kernel: vgg_classifier_forward.2
= control target key start
LH: loop header
LB: loop body
LE: loop exit
PB: predicated region body
PF: predicated region fallthrough
CT: control target
= control target key end

     0   :  { %s3596_s1 = inlined_call_operand.vmem [shape: bf16[1024,512], index: 1, kind: input, shape index: {}]   ;;  %s3597_s0 = inlined_call_operand.vmem [shape: bf16[16,1024], index: 0, kind: input, shape index: {}]   ;;  %s3598_s2 = inlined_call_operand.vmem [shape: f32[1,512], index: 2, kind: input, shape index: {}]   ;;  %s3599_s3 = inlined_call_operand.vmem [shape: bf16[16,512], index: 3, kind: output, shape index: {}]  }
   0x1   :  { %v2331_v0 = vld [vmem:[%s3596_s1 + $0xe4] ss:$16 sps:$4 sm:$0xff]   ;;  %v2335_v2 = vld [vmem:[%s3596_s1 + $0xe0] ss:$16 sps:$4 sm:$0xff]   ;;  %v35_v50 = vld [vmem:[%s3597_s0 + $0x8] sm:$0xff] }
   0x2   :  { %v2333_v1 = vld [vmem:[%s3596_s1 + $0x2e4] ss:$16 sps:$4 sm:$0xff]   ;;  %1618 = vmatprep.subr.bf16.mxu0 %v2331_v0  ;;  %v2336_v3 = vld [vmem:[%s3596_s1 + $0x2e0] ss:$16 sps:$4 sm:$0xff]   ;;  %v39_v51 = vld [vmem:[%s3597_s0 + $0x28] sm:$0xff] }
   0x3   :  { %1661 = vmatprep.subr.bf16.mxu1 %v2333_v1  ;;  %v2337_v4 = vld [vmem:[%s3596_s1 + $0xc4] ss:$16 sps:$4 sm:$0xff]   ;;  %1619 = vmatpush1.bf16.msra.mxu0 %v2335_v2  ;;  %v2341_v6 = vld [vmem:[%s3596_s1 + $0xc0] ss:$16 sps:$4 sm:$0xff]   ;;  %v2899_v55 = vcombine.high %v35_v50, %v39_v51 }
   0x4   :  { %1662 = vmatpush1.bf16.msra.mxu1 %v2336_v3  ;;  %v2339_v5 = vld [vmem:[%s3596_s1 + $0x2c4] ss:$16 sps:$4 sm:$0xff]   ;;  %1620 = vmatprep.subr.bf16.mxu0 %v2337_v4  ;;  %v2342_v7 = vld [vmem:[%s3596_s1 + $0x2c0] ss:$16 sps:$4 sm:$0xff]  }
   0x5   :  { %1663 = vmatprep.subr.bf16.mxu1 %v2339_v5  ;;  %v2343_v8 = vld [vmem:[%s3596_s1 + $0xa4] ss:$16 sps:$4 sm:$0xff]   ;;  %v2347_v10 = vld [vmem:[%s3596_s1 + $0xa0] ss:$16 sps:$4 sm:$0xff]   ;;  %1693 = vmatprep.mubr.bf16.mxu1 %v2899_v55 }
   0x6   :  { %v2345_v9 = vld [vmem:[%s3596_s1 + $0x2a4] ss:$16 sps:$4 sm:$0xff]   ;;  %v2348_v11 = vld [vmem:[%s3596_s1 + $0x2a0] ss:$16 sps:$4 sm:$0xff]  }
   0x7   :  { %1621 = vmatpush1.bf16.msra.mxu0 %v2341_v6  ;;  %v2349_v12 = vld [vmem:[%s3596_s1 + $0x84] ss:$16 sps:$4 sm:$0xff]   ;;  %v2353_v14 = vld [vmem:[%s3596_s1 + $0x80] ss:$16 sps:$4 sm:$0xff]  }
   0x8   :  { %1664 = vmatpush1.bf16.msra.mxu1 %v2342_v7  ;;  %1622 = vmatprep.subr.bf16.mxu0 %v2343_v8  ;;  %v2351_v13 = vld [vmem:[%s3596_s1 + $0x284] ss:$16 sps:$4 sm:$0xff]   ;;  %v2354_v15 = vld [vmem:[%s3596_s1 + $0x280] ss:$16 sps:$4 sm:$0xff]  }
   0x9   :  { %1665 = vmatprep.subr.bf16.mxu1 %v2345_v9  ;;  %v2355_v16 = vld [vmem:[%s3596_s1 + $0x64] ss:$16 sps:$4 sm:$0xff]   ;;  %v2359_v18 = vld [vmem:[%s3596_s1 + $0x60] ss:$16 sps:$4 sm:$0xff]   ;;  %v2953_v9 = vcombine.low %v35_v50, %v39_v51 }
   0xa   :  { %v2357_v17 = vld [vmem:[%s3596_s1 + $0x264] ss:$16 sps:$4 sm:$0xff]   ;;  %v2360_v19 = vld [vmem:[%s3596_s1 + $0x260] ss:$16 sps:$4 sm:$0xff]  }
   0xb   :  { %1623 = vmatpush1.bf16.msra.mxu0 %v2347_v10  ;;  %v2361_v20 = vld [vmem:[%s3596_s1 + $0x44] ss:$16 sps:$4 sm:$0xff]   ;;  %v2365_v22 = vld [vmem:[%s3596_s1 + $0x40] ss:$16 sps:$4 sm:$0xff]  }
   0xc   :  { %1666 = vmatpush1.bf16.msra.mxu1 %v2348_v11  ;;  %1624 = vmatprep.subr.bf16.mxu0 %v2349_v12  ;;  %v2363_v21 = vld [vmem:[%s3596_s1 + $0x244] ss:$16 sps:$4 sm:$0xff]   ;;  %v2366_v23 = vld [vmem:[%s3596_s1 + $0x240] ss:$16 sps:$4 sm:$0xff]  }
   0xd   :  { %1667 = vmatprep.subr.bf16.mxu1 %v2351_v13  ;;  %v2367_v24 = vld [vmem:[%s3596_s1 + $0x24] ss:$16 sps:$4 sm:$0xff]   ;;  %v2371_v26 = vld [vmem:[%s3596_s1 + $0x20] ss:$16 sps:$4 sm:$0xff]  }
   0xe   :  { %v2369_v25 = vld [vmem:[%s3596_s1 + $0x224] ss:$16 sps:$4 sm:$0xff]   ;;  %v2372_v27 = vld [vmem:[%s3596_s1 + $0x220] ss:$16 sps:$4 sm:$0xff]  }
   0xf   :  { %1625 = vmatpush1.bf16.msra.mxu0 %v2353_v14  ;;  %v2373_v28 = vld [vmem:[%s3596_s1 + $0x4] ss:$16 sps:$4 sm:$0xff]   ;;  %v2377_v30 = vld [vmem:[%s3596_s1] ss:$16 sps:$4 sm:$0xff]  }
  0x10   :  { %1668 = vmatpush1.bf16.msra.mxu1 %v2354_v15  ;;  %1626 = vmatprep.subr.bf16.mxu0 %v2355_v16  ;;  %v2375_v29 = vld [vmem:[%s3596_s1 + $0x204] ss:$16 sps:$4 sm:$0xff]   ;;  %v2378_v31 = vld [vmem:[%s3596_s1 + $0x200] ss:$16 sps:$4 sm:$0xff]  }
  0x11   :  { %1669 = vmatprep.subr.bf16.mxu1 %v2357_v17  ;;  %v2379_v32 = vld [vmem:[%s3596_s1 + $0x1e4] ss:$16 sps:$4 sm:$0xff]   ;;  %v2383_v34 = vld [vmem:[%s3596_s1 + $0x1e0] ss:$16 sps:$4 sm:$0xff]  }
  0x12   :  { %v2381_v33 = vld [vmem:[%s3596_s1 + $0x3e4] ss:$16 sps:$4 sm:$0xff]   ;;  %v2384_v35 = vld [vmem:[%s3596_s1 + $0x3e0] ss:$16 sps:$4 sm:$0xff]  }
  0x13   :  { %1627 = vmatpush1.bf16.msra.mxu0 %v2359_v18  ;;  %v2385_v36 = vld [vmem:[%s3596_s1 + $0x1c4] ss:$16 sps:$4 sm:$0xff]   ;;  %v2389_v38 = vld [vmem:[%s3596_s1 + $0x1c0] ss:$16 sps:$4 sm:$0xff]  }
  0x14   :  { %1670 = vmatpush1.bf16.msra.mxu1 %v2360_v19  ;;  %1628 = vmatprep.subr.bf16.mxu0 %v2361_v20  ;;  %v2387_v37 = vld [vmem:[%s3596_s1 + $0x3c4] ss:$16 sps:$4 sm:$0xff]   ;;  %v2390_v39 = vld [vmem:[%s3596_s1 + $0x3c0] ss:$16 sps:$4 sm:$0xff]  }
  0x15   :  { %1671 = vmatprep.subr.bf16.mxu1 %v2363_v21  ;;  %v2391_v40 = vld [vmem:[%s3596_s1 + $0x1a4] ss:$16 sps:$4 sm:$0xff]   ;;  %v2395_v42 = vld [vmem:[%s3596_s1 + $0x1a0] ss:$16 sps:$4 sm:$0xff]  }
  0x16   :  { %v2393_v41 = vld [vmem:[%s3596_s1 + $0x3a4] ss:$16 sps:$4 sm:$0xff]   ;;  %v2396_v43 = vld [vmem:[%s3596_s1 + $0x3a0] ss:$16 sps:$4 sm:$0xff]  }
  0x17   :  { %1629 = vmatpush1.bf16.msra.mxu0 %v2365_v22  ;;  %v2397_v44 = vld [vmem:[%s3596_s1 + $0x184] ss:$16 sps:$4 sm:$0xff]   ;;  %v2401_v46 = vld [vmem:[%s3596_s1 + $0x180] ss:$16 sps:$4 sm:$0xff]  }
  0x18   :  { %1672 = vmatpush1.bf16.msra.mxu1 %v2366_v23  ;;  %1630 = vmatprep.subr.bf16.mxu0 %v2367_v24  ;;  %v2399_v45 = vld [vmem:[%s3596_s1 + $0x384] ss:$16 sps:$4 sm:$0xff]   ;;  %v2402_v47 = vld [vmem:[%s3596_s1 + $0x380] ss:$16 sps:$4 sm:$0xff]  }
  0x19   :  { %1673 = vmatprep.subr.bf16.mxu1 %v2369_v25  ;;  %v34_v48 = vld [vmem:[%s3597_s0] sm:$0xff] }
  0x1a   :  { %v38_v49 = vld [vmem:[%s3597_s0 + $0x20] sm:$0xff] }
  0x1b   :  { %1631 = vmatpush1.bf16.msra.mxu0 %v2371_v26  ;;  %v2403_v52 = vld [vmem:[%s3596_s1 + $0x164] ss:$16 sps:$4 sm:$0xff]   ;;  %v2894_v53 = vcombine.high %v34_v48, %v38_v49  ;;  %v2407_v56 = vld [vmem:[%s3596_s1 + $0x160] ss:$16 sps:$4 sm:$0xff]   ;;  %v2951_v8 = vcombine.low %v34_v48, %v38_v49 }
  0x1c   :  { %1674 = vmatpush1.bf16.msra.mxu1 %v2372_v27  ;;  %1632 = vmatprep.subr.bf16.mxu0 %v2373_v28  ;;  %v2405_v54 = vld [vmem:[%s3596_s1 + $0x364] ss:$16 sps:$4 sm:$0xff]   ;;  %v2408_v57 = vld [vmem:[%s3596_s1 + $0x360] ss:$16 sps:$4 sm:$0xff]  }
  0x1d   :  { %1675 = vmatprep.subr.bf16.mxu1 %v2375_v29  ;;  %1650 = vmatprep.mubr.bf16.mxu0 %v2894_v53  ;;  %v2409_v58 = vld [vmem:[%s3596_s1 + $0x144] ss:$16 sps:$4 sm:$0xff]   ;;  %v2413_v60 = vld [vmem:[%s3596_s1 + $0x140] ss:$16 sps:$4 sm:$0xff]  }
  0x1e   :  { %v2411_v59 = vld [vmem:[%s3596_s1 + $0x344] ss:$16 sps:$4 sm:$0xff]   ;;  %v2414_v61 = vld [vmem:[%s3596_s1 + $0x340] ss:$16 sps:$4 sm:$0xff]  }
  0x1f   :  { %1633 = vmatpush1.bf16.msra.mxu0 %v2377_v30  ;;  %v2415_v62 = vld [vmem:[%s3596_s1 + $0x124] ss:$16 sps:$4 sm:$0xff]   ;;  %v2419_v0 = vld [vmem:[%s3596_s1 + $0x120] ss:$16 sps:$4 sm:$0xff]  }
  0x20   :  { %1676 = vmatpush1.bf16.msra.mxu1 %v2378_v31  ;;  %1634 = vmatprep.subr.bf16.mxu0 %v2379_v32  ;;  %v2417_v63 = vld [vmem:[%s3596_s1 + $0x324] ss:$16 sps:$4 sm:$0xff]   ;;  %v2420_v1 = vld [vmem:[%s3596_s1 + $0x320] ss:$16 sps:$4 sm:$0xff]  }
  0x21   :  { %1677 = vmatprep.subr.bf16.mxu1 %v2381_v33  ;;  %v2421_v2 = vld [vmem:[%s3596_s1 + $0x104] ss:$16 sps:$4 sm:$0xff]   ;;  %v2425_v4 = vld [vmem:[%s3596_s1 + $0x100] ss:$16 sps:$4 sm:$0xff]  }
  0x22   :  { %v2423_v3 = vld [vmem:[%s3596_s1 + $0x304] ss:$16 sps:$4 sm:$0xff]   ;;  %v2426_v5 = vld [vmem:[%s3596_s1 + $0x300] ss:$16 sps:$4 sm:$0xff]  }
  0x23   :  { %1635 = vmatpush2.bf16.msra.mxu0 %v2383_v34  ;;  %v2429_v6 = vld [vmem:[%s3596_s1 + $0x4e4] ss:$16 sps:$4 sm:$0xff]   ;;  %v2427_v10 = vld [vmem:[%s3596_s1 + $0x4e0] ss:$16 sps:$4 sm:$0xff]  }
  0x24   :  { %1678 = vmatpush2.bf16.msra.mxu1 %v2384_v35  ;;  %1636 = vmatprep.subr.bf16.mxu0 %v2385_v36  ;;  %v2432_v7 = vld [vmem:[%s3596_s1 + $0x6e4] ss:$16 sps:$4 sm:$0xff]   ;;  %v2430_v11 = vld [vmem:[%s3596_s1 + $0x6e0] ss:$16 sps:$4 sm:$0xff]  }
  0x25   :  { %1679 = vmatprep.subr.bf16.mxu1 %v2387_v37  ;;  %v2435_v12 = vld [vmem:[%s3596_s1 + $0x4c4] ss:$16 sps:$4 sm:$0xff]   ;;  %v2433_v14 = vld [vmem:[%s3596_s1 + $0x4c0] ss:$16 sps:$4 sm:$0xff]  }
  0x26   :  { %v2438_v13 = vld [vmem:[%s3596_s1 + $0x6c4] ss:$16 sps:$4 sm:$0xff]   ;;  %v2436_v15 = vld [vmem:[%s3596_s1 + $0x6c0] ss:$16 sps:$4 sm:$0xff]  }
  0x27   :  { %1637 = vmatpush2.bf16.msra.mxu0 %v2389_v38  ;;  %v2441_v16 = vld [vmem:[%s3596_s1 + $0x4a4] ss:$16 sps:$4 sm:$0xff]   ;;  %v2439_v18 = vld [vmem:[%s3596_s1 + $0x4a0] ss:$16 sps:$4 sm:$0xff]   ;;  %v3048_v38 = vld [vmem:[%s3597_s0 + $0x18] sm:$0xff] }
  0x28   :  { %1680 = vmatpush2.bf16.msra.mxu1 %v2390_v39  ;;  %1638 = vmatprep.subr.bf16.mxu0 %v2391_v40  ;;  %v2444_v17 = vld [vmem:[%s3596_s1 + $0x6a4] ss:$16 sps:$4 sm:$0xff]   ;;  %v2442_v19 = vld [vmem:[%s3596_s1 + $0x6a0] ss:$16 sps:$4 sm:$0xff]   ;;  %v3053_v39 = vld [vmem:[%s3597_s0 + $0x38] sm:$0xff] }
  0x29   :  { %1681 = vmatprep.subr.bf16.mxu1 %v2393_v41  ;;  %v2447_v20 = vld [vmem:[%s3596_s1 + $0x484] ss:$16 sps:$4 sm:$0xff]   ;;  %v2445_v22 = vld [vmem:[%s3596_s1 + $0x480] ss:$16 sps:$4 sm:$0xff]  }
  0x2a   :  { %v2450_v21 = vld [vmem:[%s3596_s1 + $0x684] ss:$16 sps:$4 sm:$0xff]   ;;  %v2448_v23 = vld [vmem:[%s3596_s1 + $0x680] ss:$16 sps:$4 sm:$0xff]  }
  0x2b   :  { %1639 = vmatpush2.bf16.msra.mxu0 %v2395_v42  ;;  %v2453_v24 = vld [vmem:[%s3596_s1 + $0x464] ss:$16 sps:$4 sm:$0xff]   ;;  %v2451_v26 = vld [vmem:[%s3596_s1 + $0x460] ss:$16 sps:$4 sm:$0xff]  }
  0x2c   :  { %1682 = vmatpush2.bf16.msra.mxu1 %v2396_v43  ;;  %1640 = vmatprep.subr.bf16.mxu0 %v2397_v44  ;;  %v2456_v25 = vld [vmem:[%s3596_s1 + $0x664] ss:$16 sps:$4 sm:$0xff]   ;;  %v2454_v27 = vld [vmem:[%s3596_s1 + $0x660] ss:$16 sps:$4 sm:$0xff]   ;;  %v3067_v43 = vcombine.high %v3048_v38, %v3053_v39 }
  0x2d   :  { %1683 = vmatprep.subr.bf16.mxu1 %v2399_v45  ;;  %v2459_v28 = vld [vmem:[%s3596_s1 + $0x444] ss:$16 sps:$4 sm:$0xff]   ;;  %v2457_v30 = vld [vmem:[%s3596_s1 + $0x440] ss:$16 sps:$4 sm:$0xff]  }
  0x2e   :  { %v2462_v29 = vld [vmem:[%s3596_s1 + $0x644] ss:$16 sps:$4 sm:$0xff]   ;;  %v2460_v31 = vld [vmem:[%s3596_s1 + $0x640] ss:$16 sps:$4 sm:$0xff]  }
  0x2f   :  { %1641 = vmatpush2.bf16.msra.mxu0 %v2401_v46  ;;  %v2465_v32 = vld [vmem:[%s3596_s1 + $0x424] ss:$16 sps:$4 sm:$0xff]   ;;  %v2463_v34 = vld [vmem:[%s3596_s1 + $0x420] ss:$16 sps:$4 sm:$0xff]  }
  0x30   :  { %1684 = vmatpush2.bf16.msra.mxu1 %v2402_v47  ;;  %1642 = vmatprep.subr.bf16.mxu0 %v2403_v52  ;;  %v2468_v33 = vld [vmem:[%s3596_s1 + $0x624] ss:$16 sps:$4 sm:$0xff]   ;;  %v2466_v35 = vld [vmem:[%s3596_s1 + $0x620] ss:$16 sps:$4 sm:$0xff]  }
  0x31   :  { %1685 = vmatprep.subr.bf16.mxu1 %v2405_v54  ;;  %v3038_v36 = vld [vmem:[%s3597_s0 + $0x10] sm:$0xff] }
  0x32   :  { %v3043_v37 = vld [vmem:[%s3597_s0 + $0x30] sm:$0xff] }
  0x33   :  { %1643 = vmatpush2.bf16.msra.mxu0 %v2407_v56  ;;  %v2471_v40 = vld [vmem:[%s3596_s1 + $0x404] ss:$16 sps:$4 sm:$0xff]   ;;  %v3060_v41 = vcombine.high %v3038_v36, %v3043_v37  ;;  %v2469_v44 = vld [vmem:[%s3596_s1 + $0x400] ss:$16 sps:$4 sm:$0xff]  }
  0x34   :  { %1686 = vmatpush2.bf16.msra.mxu1 %v2408_v57  ;;  %1644 = vmatprep.subr.bf16.mxu0 %v2409_v58  ;;  %v2474_v42 = vld [vmem:[%s3596_s1 + $0x604] ss:$16 sps:$4 sm:$0xff]   ;;  %v2472_v45 = vld [vmem:[%s3596_s1 + $0x600] ss:$16 sps:$4 sm:$0xff]  }
  0x35   :  { %1687 = vmatprep.subr.bf16.mxu1 %v2411_v59  ;;  %v2477_v46 = vld [vmem:[%s3596_s1 + $0x5e4] ss:$16 sps:$4 sm:$0xff]   ;;  %v2475_v48 = vld [vmem:[%s3596_s1 + $0x5e0] ss:$16 sps:$4 sm:$0xff]  }
  0x36   :  { %v2480_v47 = vld [vmem:[%s3596_s1 + $0x7e4] ss:$16 sps:$4 sm:$0xff]   ;;  %v2478_v49 = vld [vmem:[%s3596_s1 + $0x7e0] ss:$16 sps:$4 sm:$0xff]  }
  0x37   :  { %1645 = vmatpush2.bf16.msra.mxu0 %v2413_v60  ;;  %v2483_v50 = vld [vmem:[%s3596_s1 + $0x5c4] ss:$16 sps:$4 sm:$0xff]   ;;  %v2481_v52 = vld [vmem:[%s3596_s1 + $0x5c0] ss:$16 sps:$4 sm:$0xff]  }
  0x38   :  { %1688 = vmatpush2.bf16.msra.mxu1 %v2414_v61  ;;  %1646 = vmatprep.subr.bf16.mxu0 %v2415_v62  ;;  %v2486_v51 = vld [vmem:[%s3596_s1 + $0x7c4] ss:$16 sps:$4 sm:$0xff]   ;;  %v2484_v54 = vld [vmem:[%s3596_s1 + $0x7c0] ss:$16 sps:$4 sm:$0xff]  }
  0x39   :  { %1689 = vmatprep.subr.bf16.mxu1 %v2417_v63  ;;  %v2489_v56 = vld [vmem:[%s3596_s1 + $0x5a4] ss:$16 sps:$4 sm:$0xff]   ;;  %v2487_v58 = vld [vmem:[%s3596_s1 + $0x5a0] ss:$16 sps:$4 sm:$0xff]  }
  0x3a   :  { %v2492_v57 = vld [vmem:[%s3596_s1 + $0x7a4] ss:$16 sps:$4 sm:$0xff]   ;;  %v2490_v59 = vld [vmem:[%s3596_s1 + $0x7a0] ss:$16 sps:$4 sm:$0xff]  }
  0x3b   :  { %1647 = vmatpush2.bf16.msra.mxu0 %v2419_v0  ;;  %v2495_v60 = vld [vmem:[%s3596_s1 + $0x584] ss:$16 sps:$4 sm:$0xff]   ;;  %v2493_v62 = vld [vmem:[%s3596_s1 + $0x580] ss:$16 sps:$4 sm:$0xff]  }
  0x3c   :  { %1690 = vmatpush2.bf16.msra.mxu1 %v2420_v1  ;;  %1648 = vmatprep.subr.bf16.mxu0 %v2421_v2  ;;  %v2498_v61 = vld [vmem:[%s3596_s1 + $0x784] ss:$16 sps:$4 sm:$0xff]   ;;  %v2496_v63 = vld [vmem:[%s3596_s1 + $0x780] ss:$16 sps:$4 sm:$0xff]  }
  0x3d   :  { %1691 = vmatprep.subr.bf16.mxu1 %v2423_v3  ;;  %v2501_v0 = vld [vmem:[%s3596_s1 + $0x564] ss:$16 sps:$4 sm:$0xff]   ;;  %v2499_v2 = vld [vmem:[%s3596_s1 + $0x560] ss:$16 sps:$4 sm:$0xff]  }
  0x3e   :  { %v2504_v1 = vld [vmem:[%s3596_s1 + $0x764] ss:$16 sps:$4 sm:$0xff]   ;;  %v2502_v3 = vld [vmem:[%s3596_s1 + $0x760] ss:$16 sps:$4 sm:$0xff]  }
  0x3f   :  { %1649 = vmatpush2.bf16.msra.mxu0 %v2425_v4  ;;  %v2507_v4 = vld [vmem:[%s3596_s1 + $0x544] ss:$16 sps:$4 sm:$0xff]  }
  0x40   :  { %1692 = vmatpush2.bf16.msra.mxu1 %v2426_v5  ;;  %1704 = vmatprep.subr.bf16.mxu0 %v2429_v6  ;;  %v2510_v5 = vld [vmem:[%s3596_s1 + $0x744] ss:$16 sps:$4 sm:$0xff]   ;;  %v2505_v6 = vld [vmem:[%s3596_s1 + $0x540] ss:$16 sps:$4 sm:$0xff]  }
  0x41   :  { %1747 = vmatprep.subr.bf16.mxu1 %v2432_v7  ;;  %v2508_v7 = vld [vmem:[%s3596_s1 + $0x740] ss:$16 sps:$4 sm:$0xff]  }
  0x42   :  { %1651 = vmatmul.mubr.bf16.vlgmr.msra.gmra.mxu0 %v2951_v8 }
  0x43   :  { %1694 = vmatmul.mubr.bf16.vlgmr.msra.gmra.mxu1 %v2953_v9  ;;  %1705 = vmatpush1.bf16.msra.mxu0 %v2427_v10  ;;  %v2513_v10 = vld [vmem:[%s3596_s1 + $0x524] ss:$16 sps:$4 sm:$0xff]  }
  0x44   :  { %1748 = vmatpush1.bf16.msra.mxu1 %v2430_v11  ;;  %1706 = vmatprep.subr.bf16.mxu0 %v2435_v12  ;;  %v2516_v11 = vld [vmem:[%s3596_s1 + $0x724] ss:$16 sps:$4 sm:$0xff]   ;;  %v2511_v12 = vld [vmem:[%s3596_s1 + $0x520] ss:$16 sps:$4 sm:$0xff]  }
  0x45   :  { %1749 = vmatprep.subr.bf16.mxu1 %v2438_v13  ;;  %1736 = vmatprep.mubr.bf16.mxu0 %v3060_v41  ;;  %v2514_v13 = vld [vmem:[%s3596_s1 + $0x720] ss:$16 sps:$4 sm:$0xff]  }
  0x46   :  { %1779 = vmatprep.mubr.bf16.mxu1 %v3067_v43 }
  0x47   :  { %1707 = vmatpush1.bf16.msra.mxu0 %v2433_v14  ;;  %v2519_v14 = vld [vmem:[%s3596_s1 + $0x504] ss:$16 sps:$4 sm:$0xff]  }
  0x48   :  { %1750 = vmatpush1.bf16.msra.mxu1 %v2436_v15  ;;  %1708 = vmatprep.subr.bf16.mxu0 %v2441_v16  ;;  %v2522_v15 = vld [vmem:[%s3596_s1 + $0x704] ss:$16 sps:$4 sm:$0xff]   ;;  %v2517_v16 = vld [vmem:[%s3596_s1 + $0x500] ss:$16 sps:$4 sm:$0xff]  }
  0x49   :  { %1751 = vmatprep.subr.bf16.mxu1 %v2444_v17  ;;  %v2520_v17 = vld [vmem:[%s3596_s1 + $0x700] ss:$16 sps:$4 sm:$0xff]  }
  0x4b   :  { %1709 = vmatpush1.bf16.msra.mxu0 %v2439_v18  ;;  %v2525_v18 = vld [vmem:[%s3596_s1 + $0xec] ss:$16 sps:$4 sm:$0xff]  }
  0x4c   :  { %1752 = vmatpush1.bf16.msra.mxu1 %v2442_v19  ;;  %1710 = vmatprep.subr.bf16.mxu0 %v2447_v20  ;;  %v2528_v19 = vld [vmem:[%s3596_s1 + $0x2ec] ss:$16 sps:$4 sm:$0xff]   ;;  %v3181_v20 = vcombine.low %v3038_v36, %v3043_v37  ;;  %v2547_v36 = vld [vmem:[%s3596_s1 + $0x68] ss:$16 sps:$4 sm:$0xff]  }
  0x4d   :  { %1753 = vmatprep.subr.bf16.mxu1 %v2450_v21  ;;  %v3185_v21 = vcombine.low %v3048_v38, %v3053_v39  ;;  %v2550_v37 = vld [vmem:[%s3596_s1 + $0x268] ss:$16 sps:$4 sm:$0xff]   ;;  %v2555_v38 = vld [vmem:[%s3596_s1 + $0x4c] ss:$16 sps:$4 sm:$0xff]  }
  0x4e   :  { %v2558_v39 = vld [vmem:[%s3596_s1 + $0x24c] ss:$16 sps:$4 sm:$0xff]  }
  0x4f   :  { %1711 = vmatpush1.bf16.msra.mxu0 %v2445_v22  ;;  %v2523_v22 = vld [vmem:[%s3596_s1 + $0xe8] ss:$16 sps:$4 sm:$0xff]  }
  0x50   :  { %1754 = vmatpush1.bf16.msra.mxu1 %v2448_v23  ;;  %1712 = vmatprep.subr.bf16.mxu0 %v2453_v24  ;;  %v2526_v23 = vld [vmem:[%s3596_s1 + $0x2e8] ss:$16 sps:$4 sm:$0xff]   ;;  %v2531_v24 = vld [vmem:[%s3596_s1 + $0xcc] ss:$16 sps:$4 sm:$0xff]  }
  0x51   :  { %1755 = vmatprep.subr.bf16.mxu1 %v2456_v25  ;;  %v2534_v25 = vld [vmem:[%s3596_s1 + $0x2cc] ss:$16 sps:$4 sm:$0xff]  }
  0x53   :  { %1713 = vmatpush1.bf16.msra.mxu0 %v2451_v26  ;;  %v2529_v26 = vld [vmem:[%s3596_s1 + $0xc8] ss:$16 sps:$4 sm:$0xff]  }
  0x54   :  { %1756 = vmatpush1.bf16.msra.mxu1 %v2454_v27  ;;  %1714 = vmatprep.subr.bf16.mxu0 %v2459_v28  ;;  %v2532_v27 = vld [vmem:[%s3596_s1 + $0x2c8] ss:$16 sps:$4 sm:$0xff]   ;;  %v2537_v28 = vld [vmem:[%s3596_s1 + $0xac] ss:$16 sps:$4 sm:$0xff]  }
  0x55   :  { %1757 = vmatprep.subr.bf16.mxu1 %v2462_v29  ;;  %v2540_v29 = vld [vmem:[%s3596_s1 + $0x2ac] ss:$16 sps:$4 sm:$0xff]  }
  0x57   :  { %1715 = vmatpush1.bf16.msra.mxu0 %v2457_v30  ;;  %v2535_v30 = vld [vmem:[%s3596_s1 + $0xa8] ss:$16 sps:$4 sm:$0xff]  }
  0x58   :  { %1758 = vmatpush1.bf16.msra.mxu1 %v2460_v31  ;;  %1716 = vmatprep.subr.bf16.mxu0 %v2465_v32  ;;  %v2538_v31 = vld [vmem:[%s3596_s1 + $0x2a8] ss:$16 sps:$4 sm:$0xff]   ;;  %v2543_v32 = vld [vmem:[%s3596_s1 + $0x8c] ss:$16 sps:$4 sm:$0xff]  }
  0x59   :  { %1759 = vmatprep.subr.bf16.mxu1 %v2468_v33  ;;  %v2544_v33 = vld [vmem:[%s3596_s1 + $0x288] ss:$16 sps:$4 sm:$0xff]  }
  0x5b   :  { %1717 = vmatpush1.bf16.msra.mxu0 %v2463_v34  ;;  %v2549_v34 = vld [vmem:[%s3596_s1 + $0x6c] ss:$16 sps:$4 sm:$0xff]  }
  0x5c   :  { %1760 = vmatpush1.bf16.msra.mxu1 %v2466_v35  ;;  %1718 = vmatprep.subr.bf16.mxu0 %v2471_v40  ;;  %v2552_v35 = vld [vmem:[%s3596_s1 + $0x26c] ss:$16 sps:$4 sm:$0xff]   ;;  %v2553_v40 = vld [vmem:[%s3596_s1 + $0x48] ss:$16 sps:$4 sm:$0xff]  }
  0x5d   :  { %1761 = vmatprep.subr.bf16.mxu1 %v2474_v42  ;;  %v2556_v42 = vld [vmem:[%s3596_s1 + $0x248] ss:$16 sps:$4 sm:$0xff]  }
  0x5f   :  { %1719 = vmatpush1.bf16.msra.mxu0 %v2469_v44  ;;  %v2561_v44 = vld [vmem:[%s3596_s1 + $0x2c] ss:$16 sps:$4 sm:$0xff]  }
  0x60   :  { %1762 = vmatpush1.bf16.msra.mxu1 %v2472_v45  ;;  %1720 = vmatprep.subr.bf16.mxu0 %v2477_v46  ;;  %v2564_v45 = vld [vmem:[%s3596_s1 + $0x22c] ss:$16 sps:$4 sm:$0xff]   ;;  %v2559_v46 = vld [vmem:[%s3596_s1 + $0x28] ss:$16 sps:$4 sm:$0xff]  }
  0x61   :  { %1763 = vmatprep.subr.bf16.mxu1 %v2480_v47  ;;  %v2562_v47 = vld [vmem:[%s3596_s1 + $0x228] ss:$16 sps:$4 sm:$0xff]  }
  0x63   :  { %1721 = vmatpush2.bf16.msra.mxu0 %v2475_v48  ;;  %v2567_v48 = vld [vmem:[%s3596_s1 + $0xc] ss:$16 sps:$4 sm:$0xff]  }
  0x64   :  { %1764 = vmatpush2.bf16.msra.mxu1 %v2478_v49  ;;  %1722 = vmatprep.subr.bf16.mxu0 %v2483_v50  ;;  %v2570_v49 = vld [vmem:[%s3596_s1 + $0x20c] ss:$16 sps:$4 sm:$0xff]   ;;  %v2565_v50 = vld [vmem:[%s3596_s1 + $0x8] ss:$16 sps:$4 sm:$0xff]  }
  0x65   :  { %1765 = vmatprep.subr.bf16.mxu1 %v2486_v51  ;;  %v2568_v51 = vld [vmem:[%s3596_s1 + $0x208] ss:$16 sps:$4 sm:$0xff]  }
  0x67   :  { %1723 = vmatpush2.bf16.msra.mxu0 %v2481_v52  ;;  %v2573_v52 = vld [vmem:[%s3596_s1 + $0x1ec] ss:$16 sps:$4 sm:$0xff]  }
  0x68   :  { %1766 = vmatpush2.bf16.msra.mxu1 %v2484_v54  ;;  %1724 = vmatprep.subr.bf16.mxu0 %v2489_v56  ;;  %v2576_v54 = vld [vmem:[%s3596_s1 + $0x3ec] ss:$16 sps:$4 sm:$0xff]   ;;  %v2571_v56 = vld [vmem:[%s3596_s1 + $0x1e8] ss:$16 sps:$4 sm:$0xff]  }
  0x69   :  { %1767 = vmatprep.subr.bf16.mxu1 %v2492_v57  ;;  %v2574_v57 = vld [vmem:[%s3596_s1 + $0x3e8] ss:$16 sps:$4 sm:$0xff]  }
  0x6b   :  { %1725 = vmatpush2.bf16.msra.mxu0 %v2487_v58  ;;  %v2579_v58 = vld [vmem:[%s3596_s1 + $0x1cc] ss:$16 sps:$4 sm:$0xff]  }
  0x6c   :  { %1768 = vmatpush2.bf16.msra.mxu1 %v2490_v59  ;;  %1726 = vmatprep.subr.bf16.mxu0 %v2495_v60  ;;  %v2582_v59 = vld [vmem:[%s3596_s1 + $0x3cc] ss:$16 sps:$4 sm:$0xff]   ;;  %v2577_v60 = vld [vmem:[%s3596_s1 + $0x1c8] ss:$16 sps:$4 sm:$0xff]  }
  0x6d   :  { %1769 = vmatprep.subr.bf16.mxu1 %v2498_v61  ;;  %v2580_v61 = vld [vmem:[%s3596_s1 + $0x3c8] ss:$16 sps:$4 sm:$0xff]  }
  0x6f   :  { %1727 = vmatpush2.bf16.msra.mxu0 %v2493_v62  ;;  %v2585_v62 = vld [vmem:[%s3596_s1 + $0x1ac] ss:$16 sps:$4 sm:$0xff]  }
  0x70   :  { %1770 = vmatpush2.bf16.msra.mxu1 %v2496_v63  ;;  %1728 = vmatprep.subr.bf16.mxu0 %v2501_v0  ;;  %v2588_v63 = vld [vmem:[%s3596_s1 + $0x3ac] ss:$16 sps:$4 sm:$0xff]   ;;  %v2583_v0 = vld [vmem:[%s3596_s1 + $0x1a8] ss:$16 sps:$4 sm:$0xff]  }
  0x71   :  { %1771 = vmatprep.subr.bf16.mxu1 %v2504_v1  ;;  %v2586_v1 = vld [vmem:[%s3596_s1 + $0x3a8] ss:$16 sps:$4 sm:$0xff]  }
  0x73   :  { %1729 = vmatpush2.bf16.msra.mxu0 %v2499_v2  ;;  %v2591_v2 = vld [vmem:[%s3596_s1 + $0x18c] ss:$16 sps:$4 sm:$0xff]  }
  0x74   :  { %1772 = vmatpush2.bf16.msra.mxu1 %v2502_v3  ;;  %1730 = vmatprep.subr.bf16.mxu0 %v2507_v4  ;;  %v2594_v3 = vld [vmem:[%s3596_s1 + $0x38c] ss:$16 sps:$4 sm:$0xff]   ;;  %v2589_v4 = vld [vmem:[%s3596_s1 + $0x188] ss:$16 sps:$4 sm:$0xff]  }
  0x75   :  { %1773 = vmatprep.subr.bf16.mxu1 %v2510_v5  ;;  %v2592_v5 = vld [vmem:[%s3596_s1 + $0x388] ss:$16 sps:$4 sm:$0xff]  }
  0x77   :  { %1731 = vmatpush2.bf16.msra.mxu0 %v2505_v6  ;;  %v2597_v6 = vld [vmem:[%s3596_s1 + $0x16c] ss:$16 sps:$4 sm:$0xff]  }
  0x78   :  { %1774 = vmatpush2.bf16.msra.mxu1 %v2508_v7  ;;  %1732 = vmatprep.subr.bf16.mxu0 %v2513_v10  ;;  %v2600_v7 = vld [vmem:[%s3596_s1 + $0x36c] ss:$16 sps:$4 sm:$0xff]   ;;  %v2595_v10 = vld [vmem:[%s3596_s1 + $0x168] ss:$16 sps:$4 sm:$0xff]  }
  0x79   :  { %1775 = vmatprep.subr.bf16.mxu1 %v2516_v11  ;;  %v2598_v11 = vld [vmem:[%s3596_s1 + $0x368] ss:$16 sps:$4 sm:$0xff]  }
  0x7b   :  { %1733 = vmatpush2.bf16.msra.mxu0 %v2511_v12  ;;  %v2603_v12 = vld [vmem:[%s3596_s1 + $0x14c] ss:$16 sps:$4 sm:$0xff]  }
  0x7c   :  { %1776 = vmatpush2.bf16.msra.mxu1 %v2514_v13  ;;  %1734 = vmatprep.subr.bf16.mxu0 %v2519_v14  ;;  %v2606_v13 = vld [vmem:[%s3596_s1 + $0x34c] ss:$16 sps:$4 sm:$0xff]   ;;  %v2601_v14 = vld [vmem:[%s3596_s1 + $0x148] ss:$16 sps:$4 sm:$0xff]  }
  0x7d   :  { %1777 = vmatprep.subr.bf16.mxu1 %v2522_v15  ;;  %v2604_v15 = vld [vmem:[%s3596_s1 + $0x348] ss:$16 sps:$4 sm:$0xff]  }
  0x7f   :  { %1735 = vmatpush2.bf16.msra.mxu0 %v2517_v16  ;;  %v2609_v16 = vld [vmem:[%s3596_s1 + $0x12c] ss:$16 sps:$4 sm:$0xff]  }
  0x80   :  { %1778 = vmatpush2.bf16.msra.mxu1 %v2520_v17  ;;  %1790 = vmatprep.subr.bf16.mxu0 %v2525_v18  ;;  %v2612_v17 = vld [vmem:[%s3596_s1 + $0x32c] ss:$16 sps:$4 sm:$0xff]   ;;  %v2607_v18 = vld [vmem:[%s3596_s1 + $0x128] ss:$16 sps:$4 sm:$0xff]  }
  0x81   :  { %1833 = vmatprep.subr.bf16.mxu1 %v2528_v19  ;;  %v2610_v19 = vld [vmem:[%s3596_s1 + $0x328] ss:$16 sps:$4 sm:$0xff]  }
  0x82   :  { %1737 = vmatmul.mubr.bf16.vlgmr.msra.gmra.mxu0 %v3181_v20 }
  0x83   :  { %1780 = vmatmul.mubr.bf16.vlgmr.msra.gmra.mxu1 %v3185_v21  ;;  %1791 = vmatpush1.bf16.msra.mxu0 %v2523_v22  ;;  %v2615_v22 = vld [vmem:[%s3596_s1 + $0x10c] ss:$16 sps:$4 sm:$0xff]  }
  0x84   :  { %1834 = vmatpush1.bf16.msra.mxu1 %v2526_v23  ;;  %1792 = vmatprep.subr.bf16.mxu0 %v2531_v24  ;;  %v2618_v23 = vld [vmem:[%s3596_s1 + $0x30c] ss:$16 sps:$4 sm:$0xff]   ;;  %v2613_v24 = vld [vmem:[%s3596_s1 + $0x108] ss:$16 sps:$4 sm:$0xff]  }
  0x85   :  { %1835 = vmatprep.subr.bf16.mxu1 %v2534_v25  ;;  %1822 = vmatprep.mubr.bf16.mxu0 %v2894_v53  ;;  %v2546_v53 = vld [vmem:[%s3596_s1 + $0x28c] ss:$16 sps:$4 sm:$0xff]   ;;  %v2616_v25 = vld [vmem:[%s3596_s1 + $0x308] ss:$16 sps:$4 sm:$0xff]  }
  0x86   :  { %1865 = vmatprep.mubr.bf16.mxu1 %v2899_v55  ;;  %v2541_v55 = vld [vmem:[%s3596_s1 + $0x88] ss:$16 sps:$4 sm:$0xff]  }
  0x87   :  { %1793 = vmatpush1.bf16.msra.mxu0 %v2529_v26  ;;  %v2621_v26 = vld [vmem:[%s3596_s1 + $0x4ec] ss:$16 sps:$4 sm:$0xff]  }
  0x88   :  { %1836 = vmatpush1.bf16.msra.mxu1 %v2532_v27  ;;  %1794 = vmatprep.subr.bf16.mxu0 %v2537_v28  ;;  %v2624_v27 = vld [vmem:[%s3596_s1 + $0x6ec] ss:$16 sps:$4 sm:$0xff]   ;;  %v2619_v28 = vld [vmem:[%s3596_s1 + $0x4e8] ss:$16 sps:$4 sm:$0xff]  }
  0x89   :  { %1837 = vmatprep.subr.bf16.mxu1 %v2540_v29  ;;  %v2622_v29 = vld [vmem:[%s3596_s1 + $0x6e8] ss:$16 sps:$4 sm:$0xff]  }
  0x8b   :  { %1795 = vmatpush1.bf16.msra.mxu0 %v2535_v30  ;;  %v2627_v30 = vld [vmem:[%s3596_s1 + $0x4cc] ss:$16 sps:$4 sm:$0xff]  }
  0x8c   :  { %1838 = vmatpush1.bf16.msra.mxu1 %v2538_v31  ;;  %1796 = vmatprep.subr.bf16.mxu0 %v2543_v32  ;;  %v2630_v31 = vld [vmem:[%s3596_s1 + $0x6cc] ss:$16 sps:$4 sm:$0xff]   ;;  %v2625_v32 = vld [vmem:[%s3596_s1 + $0x4c8] ss:$16 sps:$4 sm:$0xff]  }
  0x8d   :  { %1839 = vmatprep.subr.bf16.mxu1 %v2546_v53  ;;  %v2628_v53 = vld [vmem:[%s3596_s1 + $0x6c8] ss:$16 sps:$4 sm:$0xff]  }
  0x8f   :  { %1797 = vmatpush1.bf16.msra.mxu0 %v2541_v55  ;;  %v2633_v55 = vld [vmem:[%s3596_s1 + $0x4ac] ss:$16 sps:$4 sm:$0xff]  }
  0x90   :  { %1840 = vmatpush1.bf16.msra.mxu1 %v2544_v33  ;;  %1798 = vmatprep.subr.bf16.mxu0 %v2549_v34  ;;  %v2634_v33 = vld [vmem:[%s3596_s1 + $0x6a8] ss:$16 sps:$4 sm:$0xff]   ;;  %v2639_v34 = vld [vmem:[%s3596_s1 + $0x48c] ss:$16 sps:$4 sm:$0xff]  }
  0x91   :  { %1841 = vmatprep.subr.bf16.mxu1 %v2552_v35  ;;  %v2640_v35 = vld [vmem:[%s3596_s1 + $0x688] ss:$16 sps:$4 sm:$0xff]  }
  0x93   :  { %1799 = vmatpush1.bf16.msra.mxu0 %v2547_v36  ;;  %v2645_v36 = vld [vmem:[%s3596_s1 + $0x46c] ss:$16 sps:$4 sm:$0xff]  }
  0x94   :  { %1842 = vmatpush1.bf16.msra.mxu1 %v2550_v37  ;;  %1800 = vmatprep.subr.bf16.mxu0 %v2555_v38  ;;  %v2648_v37 = vld [vmem:[%s3596_s1 + $0x66c] ss:$16 sps:$4 sm:$0xff]   ;;  %v2643_v38 = vld [vmem:[%s3596_s1 + $0x468] ss:$16 sps:$4 sm:$0xff]  }
  0x95   :  { %1843 = vmatprep.subr.bf16.mxu1 %v2558_v39  ;;  %v2646_v39 = vld [vmem:[%s3596_s1 + $0x668] ss:$16 sps:$4 sm:$0xff]  }
  0x97   :  { %1801 = vmatpush1.bf16.msra.mxu0 %v2553_v40  ;;  %v2651_v40 = vld [vmem:[%s3596_s1 + $0x44c] ss:$16 sps:$4 sm:$0xff]  }
  0x98   :  { %1844 = vmatpush1.bf16.msra.mxu1 %v2556_v42  ;;  %1802 = vmatprep.subr.bf16.mxu0 %v2561_v44  ;;  %v2654_v42 = vld [vmem:[%s3596_s1 + $0x64c] ss:$16 sps:$4 sm:$0xff]   ;;  %v2649_v44 = vld [vmem:[%s3596_s1 + $0x448] ss:$16 sps:$4 sm:$0xff]  }
  0x99   :  { %1845 = vmatprep.subr.bf16.mxu1 %v2564_v45  ;;  %v2652_v45 = vld [vmem:[%s3596_s1 + $0x648] ss:$16 sps:$4 sm:$0xff]  }
  0x9b   :  { %1803 = vmatpush1.bf16.msra.mxu0 %v2559_v46  ;;  %v2657_v46 = vld [vmem:[%s3596_s1 + $0x42c] ss:$16 sps:$4 sm:$0xff]  }
  0x9c   :  { %1846 = vmatpush1.bf16.msra.mxu1 %v2562_v47  ;;  %1804 = vmatprep.subr.bf16.mxu0 %v2567_v48  ;;  %v2660_v47 = vld [vmem:[%s3596_s1 + $0x62c] ss:$16 sps:$4 sm:$0xff]   ;;  %v2655_v48 = vld [vmem:[%s3596_s1 + $0x428] ss:$16 sps:$4 sm:$0xff]  }
  0x9d   :  { %1847 = vmatprep.subr.bf16.mxu1 %v2570_v49  ;;  %v2658_v49 = vld [vmem:[%s3596_s1 + $0x628] ss:$16 sps:$4 sm:$0xff]  }
  0x9f   :  { %1805 = vmatpush1.bf16.msra.mxu0 %v2565_v50  ;;  %v2663_v50 = vld [vmem:[%s3596_s1 + $0x40c] ss:$16 sps:$4 sm:$0xff]  }
  0xa0   :  { %1848 = vmatpush1.bf16.msra.mxu1 %v2568_v51  ;;  %1806 = vmatprep.subr.bf16.mxu0 %v2573_v52  ;;  %v2666_v51 = vld [vmem:[%s3596_s1 + $0x60c] ss:$16 sps:$4 sm:$0xff]   ;;  %v2661_v52 = vld [vmem:[%s3596_s1 + $0x408] ss:$16 sps:$4 sm:$0xff]  }
  0xa1   :  { %1849 = vmatprep.subr.bf16.mxu1 %v2576_v54  ;;  %v2664_v54 = vld [vmem:[%s3596_s1 + $0x608] ss:$16 sps:$4 sm:$0xff]  }
  0xa3   :  { %1807 = vmatpush2.bf16.msra.mxu0 %v2571_v56  ;;  %v2669_v56 = vld [vmem:[%s3596_s1 + $0x5ec] ss:$16 sps:$4 sm:$0xff]  }
  0xa4   :  { %1850 = vmatpush2.bf16.msra.mxu1 %v2574_v57  ;;  %1808 = vmatprep.subr.bf16.mxu0 %v2579_v58  ;;  %v2672_v57 = vld [vmem:[%s3596_s1 + $0x7ec] ss:$16 sps:$4 sm:$0xff]   ;;  %v2667_v58 = vld [vmem:[%s3596_s1 + $0x5e8] ss:$16 sps:$4 sm:$0xff]  }
  0xa5   :  { %1851 = vmatprep.subr.bf16.mxu1 %v2582_v59  ;;  %v2670_v59 = vld [vmem:[%s3596_s1 + $0x7e8] ss:$16 sps:$4 sm:$0xff]  }
  0xa7   :  { %1809 = vmatpush2.bf16.msra.mxu0 %v2577_v60  ;;  %v2675_v60 = vld [vmem:[%s3596_s1 + $0x5cc] ss:$16 sps:$4 sm:$0xff]  }
  0xa8   :  { %1852 = vmatpush2.bf16.msra.mxu1 %v2580_v61  ;;  %1810 = vmatprep.subr.bf16.mxu0 %v2585_v62  ;;  %v2678_v61 = vld [vmem:[%s3596_s1 + $0x7cc] ss:$16 sps:$4 sm:$0xff]   ;;  %v2673_v62 = vld [vmem:[%s3596_s1 + $0x5c8] ss:$16 sps:$4 sm:$0xff]  }
  0xa9   :  { %1853 = vmatprep.subr.bf16.mxu1 %v2588_v63  ;;  %v2676_v63 = vld [vmem:[%s3596_s1 + $0x7c8] ss:$16 sps:$4 sm:$0xff]  }
  0xab   :  { %1811 = vmatpush2.bf16.msra.mxu0 %v2583_v0  ;;  %v2681_v0 = vld [vmem:[%s3596_s1 + $0x5ac] ss:$16 sps:$4 sm:$0xff]  }
  0xac   :  { %1854 = vmatpush2.bf16.msra.mxu1 %v2586_v1  ;;  %1812 = vmatprep.subr.bf16.mxu0 %v2591_v2  ;;  %v2684_v1 = vld [vmem:[%s3596_s1 + $0x7ac] ss:$16 sps:$4 sm:$0xff]   ;;  %v2679_v2 = vld [vmem:[%s3596_s1 + $0x5a8] ss:$16 sps:$4 sm:$0xff]  }
  0xad   :  { %1855 = vmatprep.subr.bf16.mxu1 %v2594_v3  ;;  %v2682_v3 = vld [vmem:[%s3596_s1 + $0x7a8] ss:$16 sps:$4 sm:$0xff]  }
  0xaf   :  { %1813 = vmatpush2.bf16.msra.mxu0 %v2589_v4  ;;  %v2687_v4 = vld [vmem:[%s3596_s1 + $0x58c] ss:$16 sps:$4 sm:$0xff]  }
  0xb0   :  { %1856 = vmatpush2.bf16.msra.mxu1 %v2592_v5  ;;  %1814 = vmatprep.subr.bf16.mxu0 %v2597_v6  ;;  %v2690_v5 = vld [vmem:[%s3596_s1 + $0x78c] ss:$16 sps:$4 sm:$0xff]   ;;  %v2685_v6 = vld [vmem:[%s3596_s1 + $0x588] ss:$16 sps:$4 sm:$0xff]  }
  0xb1   :  { %1857 = vmatprep.subr.bf16.mxu1 %v2600_v7  ;;  %v2688_v7 = vld [vmem:[%s3596_s1 + $0x788] ss:$16 sps:$4 sm:$0xff]  }
  0xb3   :  { %1815 = vmatpush2.bf16.msra.mxu0 %v2595_v10  ;;  %v2693_v10 = vld [vmem:[%s3596_s1 + $0x56c] ss:$16 sps:$4 sm:$0xff]  }
  0xb4   :  { %1858 = vmatpush2.bf16.msra.mxu1 %v2598_v11  ;;  %1816 = vmatprep.subr.bf16.mxu0 %v2603_v12  ;;  %v2696_v11 = vld [vmem:[%s3596_s1 + $0x76c] ss:$16 sps:$4 sm:$0xff]   ;;  %v2691_v12 = vld [vmem:[%s3596_s1 + $0x568] ss:$16 sps:$4 sm:$0xff]  }
  0xb5   :  { %1859 = vmatprep.subr.bf16.mxu1 %v2606_v13  ;;  %v2694_v13 = vld [vmem:[%s3596_s1 + $0x768] ss:$16 sps:$4 sm:$0xff]  }
  0xb7   :  { %1817 = vmatpush2.bf16.msra.mxu0 %v2601_v14  ;;  %v2699_v14 = vld [vmem:[%s3596_s1 + $0x54c] ss:$16 sps:$4 sm:$0xff]  }
  0xb8   :  { %1860 = vmatpush2.bf16.msra.mxu1 %v2604_v15  ;;  %1818 = vmatprep.subr.bf16.mxu0 %v2609_v16  ;;  %v2702_v15 = vld [vmem:[%s3596_s1 + $0x74c] ss:$16 sps:$4 sm:$0xff]   ;;  %v2697_v16 = vld [vmem:[%s3596_s1 + $0x548] ss:$16 sps:$4 sm:$0xff]  }
  0xb9   :  { %1861 = vmatprep.subr.bf16.mxu1 %v2612_v17  ;;  %v2700_v17 = vld [vmem:[%s3596_s1 + $0x748] ss:$16 sps:$4 sm:$0xff]  }
  0xbb   :  { %1819 = vmatpush2.bf16.msra.mxu0 %v2607_v18  ;;  %v2705_v18 = vld [vmem:[%s3596_s1 + $0x52c] ss:$16 sps:$4 sm:$0xff]  }
  0xbc   :  { %1862 = vmatpush2.bf16.msra.mxu1 %v2610_v19  ;;  %1820 = vmatprep.subr.bf16.mxu0 %v2615_v22  ;;  %v2708_v19 = vld [vmem:[%s3596_s1 + $0x72c] ss:$16 sps:$4 sm:$0xff]   ;;  %v2703_v22 = vld [vmem:[%s3596_s1 + $0x528] ss:$16 sps:$4 sm:$0xff]  }
  0xbd   :  { %1863 = vmatprep.subr.bf16.mxu1 %v2618_v23  ;;  %v2706_v23 = vld [vmem:[%s3596_s1 + $0x728] ss:$16 sps:$4 sm:$0xff]  }
  0xbf   :  { %1821 = vmatpush2.bf16.msra.mxu0 %v2613_v24  ;;  %v2711_v24 = vld [vmem:[%s3596_s1 + $0x50c] ss:$16 sps:$4 sm:$0xff]  }
  0xc0   :  { %1864 = vmatpush2.bf16.msra.mxu1 %v2616_v25  ;;  %1876 = vmatprep.subr.bf16.mxu0 %v2621_v26  ;;  %v2714_v25 = vld [vmem:[%s3596_s1 + $0x70c] ss:$16 sps:$4 sm:$0xff]   ;;  %v2709_v26 = vld [vmem:[%s3596_s1 + $0x508] ss:$16 sps:$4 sm:$0xff]  }
  0xc1   :  { %1919 = vmatprep.subr.bf16.mxu1 %v2624_v27  ;;  %v2712_v27 = vld [vmem:[%s3596_s1 + $0x708] ss:$16 sps:$4 sm:$0xff]  }
  0xc2   :  { %1823 = vmatmul.mubr.bf16.vlgmr.msra.gmra.mxu0 %v2951_v8  ;;  %v2636_v8 = vld [vmem:[%s3596_s1 + $0x6ac] ss:$16 sps:$4 sm:$0xff]  }
  0xc3   :  { %1866 = vmatmul.mubr.bf16.vlgmr.msra.gmra.mxu1 %v2953_v9  ;;  %1877 = vmatpush1.bf16.msra.mxu0 %v2619_v28  ;;  %v2631_v9 = vld [vmem:[%s3596_s1 + $0x4a8] ss:$16 sps:$4 sm:$0xff]  }
  0xc4   :  { %1920 = vmatpush1.bf16.msra.mxu1 %v2622_v29  ;;  %1878 = vmatprep.subr.bf16.mxu0 %v2627_v30  ;;  %v1991_v30 = vlaneseq }
  0xc5   :  { %1921 = vmatprep.subr.bf16.mxu1 %v2630_v31  ;;  %1908 = vmatprep.mubr.bf16.mxu0 %v3060_v41  ;;  %v2642_v41 = vld [vmem:[%s3596_s1 + $0x68c] ss:$16 sps:$4 sm:$0xff]  }
  0xc6   :  { %1951 = vmatprep.mubr.bf16.mxu1 %v3067_v43  ;;  %v2637_v43 = vld [vmem:[%s3596_s1 + $0x488] ss:$16 sps:$4 sm:$0xff]  }
  0xc7   :  { %1879 = vmatpush1.bf16.msra.mxu0 %v2625_v32 }
  0xc8   :  { %1922 = vmatpush1.bf16.msra.mxu1 %v2628_v53  ;;  %1880 = vmatprep.subr.bf16.mxu0 %v2633_v55  ;;  %v3575_v53 = vshrl.u32 %v1991_v30, 7 }
  0xc9   :  { %1923 = vmatprep.subr.bf16.mxu1 %v2636_v8 }
  0xcb   :  { %1881 = vmatpush1.bf16.msra.mxu0 %v2631_v9  ;;  %v1993_v9 = vsub.s32 0, %v3575_v53 }
  0xcc   :  { %1924 = vmatpush1.bf16.msra.mxu1 %v2634_v33  ;;  %1882 = vmatprep.subr.bf16.mxu0 %v2639_v34 }
  0xcd   :  { %1925 = vmatprep.subr.bf16.mxu1 %v2642_v41  ;;  %v1989_v41 = vld [vmem:[%s3598_s2] sm:$0xf] }
  0xcf   :  { %1883 = vmatpush1.bf16.msra.mxu0 %v2637_v43 }
  0xd0   :  { %1926 = vmatpush1.bf16.msra.mxu1 %v2640_v35  ;;  %1884 = vmatprep.subr.bf16.mxu0 %v2645_v36 }
  0xd1   :  { %1927 = vmatprep.subr.bf16.mxu1 %v2648_v37 }
  0xd3   :  { %1885 = vmatpush1.bf16.msra.mxu0 %v2643_v38  ;;  %v1994_v38 = vrot.slane %v1989_v41, %v1993_v9 }
  0xd4   :  { %1928 = vmatpush1.bf16.msra.mxu1 %v2646_v39  ;;  %1886 = vmatprep.subr.bf16.mxu0 %v2651_v40 }
  0xd5   :  { %1929 = vmatprep.subr.bf16.mxu1 %v2654_v42 }
  0xd7   :  { %1887 = vmatpush1.bf16.msra.mxu0 %v2649_v44 }
  0xd8   :  { %1930 = vmatpush1.bf16.msra.mxu1 %v2652_v45  ;;  %1888 = vmatprep.subr.bf16.mxu0 %v2657_v46 }
  0xd9   :  { %1931 = vmatprep.subr.bf16.mxu1 %v2660_v47 }
  0xdb   :  { %1889 = vmatpush1.bf16.msra.mxu0 %v2655_v48 }
  0xdc   :  { %1932 = vmatpush1.bf16.msra.mxu1 %v2658_v49  ;;  %1890 = vmatprep.subr.bf16.mxu0 %v2663_v50 }
  0xdd   :  { %1933 = vmatprep.subr.bf16.mxu1 %v2666_v51 }
  0xdf   :  { %1891 = vmatpush1.bf16.msra.mxu0 %v2661_v52 }
  0xe0   :  { %1934 = vmatpush1.bf16.msra.mxu1 %v2664_v54  ;;  %1892 = vmatprep.subr.bf16.mxu0 %v2669_v56 }
  0xe1   :  { %1935 = vmatprep.subr.bf16.mxu1 %v2672_v57 }
  0xe3   :  { %1893 = vmatpush2.bf16.msra.mxu0 %v2667_v58 }
  0xe4   :  { %1936 = vmatpush2.bf16.msra.mxu1 %v2670_v59  ;;  %1894 = vmatprep.subr.bf16.mxu0 %v2675_v60 }
  0xe5   :  { %1937 = vmatprep.subr.bf16.mxu1 %v2678_v61 }
  0xe7   :  { %1895 = vmatpush2.bf16.msra.mxu0 %v2673_v62 }
  0xe8   :  { %1938 = vmatpush2.bf16.msra.mxu1 %v2676_v63  ;;  %1896 = vmatprep.subr.bf16.mxu0 %v2681_v0 }
  0xe9   :  { %1939 = vmatprep.subr.bf16.mxu1 %v2684_v1 }
  0xeb   :  { %1897 = vmatpush2.bf16.msra.mxu0 %v2679_v2 }
  0xec   :  { %1940 = vmatpush2.bf16.msra.mxu1 %v2682_v3  ;;  %1898 = vmatprep.subr.bf16.mxu0 %v2687_v4 }
  0xed   :  { %1941 = vmatprep.subr.bf16.mxu1 %v2690_v5 }
  0xef   :  { %1899 = vmatpush2.bf16.msra.mxu0 %v2685_v6 }
  0xf0   :  { %1942 = vmatpush2.bf16.msra.mxu1 %v2688_v7  ;;  %1900 = vmatprep.subr.bf16.mxu0 %v2693_v10 }
  0xf1   :  { %1943 = vmatprep.subr.bf16.mxu1 %v2696_v11 }
  0xf3   :  { %1901 = vmatpush2.bf16.msra.mxu0 %v2691_v12 }
  0xf4   :  { %1944 = vmatpush2.bf16.msra.mxu1 %v2694_v13  ;;  %1902 = vmatprep.subr.bf16.mxu0 %v2699_v14  ;;  %v2001_v13 = vsub.s32 2, %v3575_v53 }
  0xf5   :  { %1945 = vmatprep.subr.bf16.mxu1 %v2702_v15 }
  0xf7   :  { %1903 = vmatpush2.bf16.msra.mxu0 %v2697_v16 }
  0xf8   :  { %1946 = vmatpush2.bf16.msra.mxu1 %v2700_v17  ;;  %1904 = vmatprep.subr.bf16.mxu0 %v2705_v18  ;;  %v2005_v17 = vsub.s32 3, %v3575_v53 }
  0xf9   :  { %1947 = vmatprep.subr.bf16.mxu1 %v2708_v19 }
  0xfa   :  { %v2006_v30 = vrot.slane %v1989_v41, %v2005_v17 }
  0xfb   :  { %1905 = vmatpush2.bf16.msra.mxu0 %v2703_v22 }
  0xfc   :  { %1948 = vmatpush2.bf16.msra.mxu1 %v2706_v23  ;;  %1906 = vmatprep.subr.bf16.mxu0 %v2711_v24  ;;  %v2002_v24 = vrot.slane %v1989_v41, %v2001_v13 }
  0xfd   :  { %1949 = vmatprep.subr.bf16.mxu1 %v2714_v25 }
  0xff   :  { %1907 = vmatpush2.bf16.msra.mxu0 %v2709_v26 }
 0x100   :  { %1950 = vmatpush2.bf16.msra.mxu1 %v2712_v27 }
 0x102   :  { %1909 = vmatmul.mubr.bf16.vlgmr.msra.gmra.mxu0 %v3181_v20  ;;  %v1652_v28 = vpop.f32.mrf.mxu0 }
 0x103   :  { %1952 = vmatmul.mubr.bf16.vlgmr.msra.gmra.mxu1 %v3185_v21  ;;  %v1695_v29 = vpop.f32.mrf.mxu1  ;;  %v1997_v21 = vsub.s32 1, %v3575_v53 }
 0x104   :  { %v1654_v31 = vpop.f32.mrf.mxu0  ;;  %v1696_v20 = vadd.f32 %v1695_v29, %v1652_v28 }
 0x105   :  { %v1697_v32 = vpop.f32.mrf.mxu1  ;;  %v1998_v46 = vrot.slane %v1989_v41, %v1997_v21 }
 0x106   :  { %v1656_v55 = vpop.f32.mrf.mxu0  ;;  %v1698_v36 = vadd.f32 %v1697_v32, %v1654_v31 }
 0x107   :  { %v1699_v8 = vpop.f32.mrf.mxu1 }
 0x108   :  { %v1658_v33 = vpop.f32.mrf.mxu0  ;;  %v1700_v42 = vadd.f32 %v1699_v8, %v1656_v55 }
 0x109   :  { %v1701_v34 = vpop.f32.mrf.mxu1 }
 0x10a   :  { %v1702_v49 = vadd.f32 %v1701_v34, %v1658_v33 }
 0x142   :  { %v1738_v43 = vpop.f32.mrf.mxu0 }
 0x143   :  { %v1781_v35 = vpop.f32.mrf.mxu1  ;;  %v1739_v37 = vadd.f32 %v1738_v43, %v1696_v20 }
 0x144   :  { %v1740_v39 = vpop.f32.mrf.mxu0 }
 0x145   :  { %v1783_v40 = vpop.f32.mrf.mxu1  ;;  %v1782_v44 = vadd.f32 %v1781_v35, %v1739_v37  ;;  %v1741_v45 = vadd.f32 %v1740_v39, %v1698_v36 }
 0x146   :  { %v1742_v47 = vpop.f32.mrf.mxu0 }
 0x147   :  { %v1785_v48 = vpop.f32.mrf.mxu1  ;;  %v2011_v50 = vadd.f32 %v1994_v38, %v1782_v44  ;;  %v1784_v51 = vadd.f32 %v1783_v40, %v1741_v45  ;;  %v1743_v52 = vadd.f32 %v1742_v47, %v1700_v42 }
 0x148   :  { %v1744_v54 = vpop.f32.mrf.mxu0 }
 0x149   :  { %v2012_v56 = vadd.f32 %v1998_v46, %v1784_v51  ;;  %v1786_v57 = vadd.f32 %v1785_v48, %v1743_v52  ;;  %v1745_v58 = vadd.f32 %v1744_v54, %v1702_v49  ;;  %v1787_v59 = vpop.f32.mrf.mxu1  ;;  %v2019_v60 = vmax.f32 %v2011_v50, 0.0 }
 0x14b   :  { %v2020_v61 = vmax.f32 %v2012_v56, 0.0  ;;  %v2015_v62 = vadd.f32 %v1994_v38, %v1786_v57  ;;  %v1788_v63 = vadd.f32 %v1787_v59, %v1745_v58 }
 0x14d   :  { %v2327_v0 = vpack.c.bf16 %v2020_v61, %v2019_v60  ;;  %v2016_v1 = vadd.f32 %v1998_v46, %v1788_v63  ;;  %v2023_v2 = vmax.f32 %v2015_v62, 0.0 }
 0x14f   :  { %2051 = vst [vmem:[%s3599_s3] sm:$0xff] %v2327_v0  ;;  %v2024_v3 = vmax.f32 %v2016_v1, 0.0 }
 0x151   :  { %v2329_v4 = vpack.c.bf16 %v2024_v3, %v2023_v2 }
 0x153   :  { %2053 = vst [vmem:[%s3599_s3 + $0x10] sm:$0xff] %v2329_v4 }
 0x182   :  { %v1824_v5 = vpop.f32.mrf.mxu0 }
 0x183   :  { %v1867_v6 = vpop.f32.mrf.mxu1 }
 0x184   :  { %v1826_v7 = vpop.f32.mrf.mxu0  ;;  %v1868_v16 = vadd.f32 %v1867_v6, %v1824_v5 }
 0x185   :  { %v1869_v10 = vpop.f32.mrf.mxu1 }
 0x186   :  { %v1828_v11 = vpop.f32.mrf.mxu0  ;;  %v1870_v22 = vadd.f32 %v1869_v10, %v1826_v7 }
 0x187   :  { %v1871_v12 = vpop.f32.mrf.mxu1 }
 0x188   :  { %v1830_v14 = vpop.f32.mrf.mxu0  ;;  %v1872_v27 = vadd.f32 %v1871_v12, %v1828_v11 }
 0x189   :  { %v1873_v15 = vpop.f32.mrf.mxu1 }
 0x18a   :  { %v1874_v55 = vadd.f32 %v1873_v15, %v1830_v14 }
 0x1c2   :  { %v1910_v18 = vpop.f32.mrf.mxu0 }
 0x1c3   :  { %v1953_v19 = vpop.f32.mrf.mxu1  ;;  %v1911_v23 = vadd.f32 %v1910_v18, %v1868_v16 }
 0x1c4   :  { %v1912_v25 = vpop.f32.mrf.mxu0 }
 0x1c5   :  { %v1955_v26 = vpop.f32.mrf.mxu1  ;;  %v1954_v28 = vadd.f32 %v1953_v19, %v1911_v23  ;;  %v1913_v29 = vadd.f32 %v1912_v25, %v1870_v22 }
 0x1c6   :  { %v1914_v31 = vpop.f32.mrf.mxu0 }
 0x1c7   :  { %v1957_v32 = vpop.f32.mrf.mxu1  ;;  %v2013_v8 = vadd.f32 %v2002_v24, %v1954_v28  ;;  %v1956_v9 = vadd.f32 %v1955_v26, %v1913_v29  ;;  %v1915_v33 = vadd.f32 %v1914_v31, %v1872_v27 }
 0x1c8   :  { %v1916_v34 = vpop.f32.mrf.mxu0 }
 0x1c9   :  { %v2014_v20 = vadd.f32 %v2006_v30, %v1956_v9  ;;  %v1958_v53 = vadd.f32 %v1957_v32, %v1915_v33  ;;  %v1917_v21 = vadd.f32 %v1916_v34, %v1874_v55  ;;  %v1959_v43 = vpop.f32.mrf.mxu1  ;;  %v2021_v35 = vmax.f32 %v2013_v8, 0.0 }
 0x1cb   :  { %v2022_v36 = vmax.f32 %v2014_v20, 0.0  ;;  %v2017_v37 = vadd.f32 %v2002_v24, %v1958_v53  ;;  %v1960_v38 = vadd.f32 %v1959_v43, %v1917_v21 }
 0x1cd   :  { %v2328_v39 = vpack.c.bf16 %v2022_v36, %v2021_v35  ;;  %v2018_v40 = vadd.f32 %v2006_v30, %v1960_v38  ;;  %v2025_v41 = vmax.f32 %v2017_v37, 0.0 }
 0x1cf   :  { %2052 = vst [vmem:[%s3599_s3 + $0x8] sm:$0xff] %v2328_v39  ;;  %v2026_v42 = vmax.f32 %v2018_v40, 0.0 }
 0x1d1   :  { %v2330_v44 = vpack.c.bf16 %v2026_v42, %v2025_v41 }
 0x1d3   :  { %2054 = vst [vmem:[%s3599_s3 + $0x18] sm:$0xff] %v2330_v44 }

</bundles_post_ra>
